<compile_context>
chip_gen: v7x
topology: tpu7x:2x2x1
jax: 0.10.0
libtpu: 0.0.40
codegen_flags: <defaults>
</compile_context>

<pallas_src>
import functools

import jax
import jax.numpy as jnp
from jax.experimental import pallas as pl
from jax.experimental.pallas import tpu as pltpu


def dh_dendritic_kernel(v_threshold, num_branches, time_block, b_pad, o_tile,
                        x_ref, w_ref, cp_ref, rp_ref, init_ref,
                        mem_out_ref, spike_out_ref, d_ref,
                        dense_sc, mem_sc, spike_sc):
    NB, TT = num_branches, time_block
    tb = pl.program_id(1)                      # sequential time-block index

    @pl.when(tb == 0)
    def _init():
        for n in range(NB):
            d_ref[n] = init_ref[n]             # dendritic state d0
        mem_sc[...] = init_ref[NB]             # mem0
        spike_sc[...] = init_ref[NB + 1]       # spike0

    # ---- one merged block-diagonal matmul for the whole time block (MXU) ---
    # x_ref: (TT*B_pad, din) bf16, w_ref: (din, NB*o_tile) bf16 block-diagonal.
    dense = jnp.dot(x_ref[...], w_ref[...], preferred_element_type=jnp.float32)
    # Fold bias and the time-independent (1 - beta) column scale in ONE
    # elementwise pass, outside the sequential recurrence:
    #   dense' = (x @ W + b) * (1 - beta)
    dense_sc[...] = (dense + cp_ref[0]) * cp_ref[1]

    alpha = rp_ref[NB]                         # sigmoid(tau_m), (1, o_tile)
    oma = rp_ref[NB + 1]                       # 1 - sigmoid(tau_m), precomputed
    betas = [rp_ref[n] for n in range(NB)]     # sigmoid(tau_n) per branch

    # ---- cheap elementwise recurrence over the TT steps of this block ------
    def step(s, carry):
        row = s * b_pad
        l_input = None
        for n in range(NB):
            d_n = betas[n] * d_ref[n] + dense_sc[pl.ds(row, b_pad),
                                                 pl.ds(n * o_tile, o_tile)]
            d_ref[n] = d_n
            l_input = d_n if l_input is None else l_input + d_n
        mem = alpha * mem_sc[...] + oma * l_input - v_threshold * spike_sc[...]
        # Forward of MultiGaussianSurrogate is a Heaviside step on (mem - vth).
        # TODO(synk): the multi-Gaussian surrogate applies to the backward pass
        # only; training needs a custom_vjp.
        spike = (mem > v_threshold).astype(jnp.float32)
        mem_sc[...] = mem
        spike_sc[...] = spike
        mem_out_ref[s] = mem
        spike_out_ref[s] = spike.astype(spike_out_ref.dtype)
        return carry

    jax.lax.fori_loop(0, TT, step, 0, unroll=True if TT <= 16 else 8)


def _pick_time_block(T, B_pad, NB, OT, din):
    """Largest divisor TT of T with a modest per-block VMEM footprint, aiming
    for an MXU-friendly M = TT*B_pad in the 256-512 range (fits v7x 64 MiB)."""
    budget = 8 * 1024 * 1024
    best = 1
    for tt in range(1, T + 1):
        if T % tt:
            continue
        m = tt * B_pad
        dense_bytes = m * NB * OT * 4                       # f32 dense scratch
        io_bytes = 2 * (m * din * 2 + tt * B_pad * OT * 6)  # x + mem/spike (dbl-buf)
        if dense_bytes + io_bytes > budget:
            break
        best = tt
        if m >= 512:
            break
    return best


def dh_dendritic_forward_seq(x_seq, weight, bias, tau_m, tau_n,
                             mem0, spike0, d_input0,
                             *, num_branches, v_threshold=1.0):
    """Run the layer over a whole (T, B, input_dim) spike sequence.

    Returns (mem_seq, spike_seq, d_input_final):
      mem_seq/spike_seq: (T, B, output_dim); d_input_final: (B, output_dim, NB).
    Assumes the dendritic connectivity mask (apply_mask) has been applied to
    `weight`, i.e. row o*NB+n is zero outside input chunk n (module design).
    """
    T, B, input_dim = x_seq.shape
    O = int(tau_m.shape[0])
    NB = int(num_branches)
    pad = (input_dim // NB * NB + NB - input_dim) % NB
    din = input_dim + pad
    chunk = din // NB
    assert weight.shape == (O * NB, din), (weight.shape, (O * NB, din))
    assert bias.shape == (O * NB,)
    assert tau_n.shape == (O, NB)

    f32 = jnp.float32
    B_pad = max(8, -(-B // 8) * 8)          # sublane-aligned batch
    O_pad = max(128, -(-O // 128) * 128)    # lane-aligned neuron axis

    # v7x: split the (independent) neuron axis across both TensorCores.
    n_ot = 2 if (O_pad >= 256 and O_pad % 256 == 0) else 1
    OT = O_pad // n_ot
    NBO = NB * OT

    TT = _pick_time_block(T, B_pad, NB, OT, din)
    num_blocks = T // TT

    # ---- one-time packing / layout (hoisted out of the time loop) ----------
    # x: (T, B, input_dim) -> (T//TT, TT*B_pad, din) bf16, din on the lane axis
    x = jnp.pad(x_seq.astype(f32), ((0, 0), (0, B_pad - B), (0, pad)))
    x_packed = x.reshape(num_blocks, TT * B_pad, din).astype(jnp.bfloat16)

    # weight (masked, block-diagonal) -> merged (n_ot, din, NB*OT) bf16
    w_o_nb = weight.astype(f32).reshape(O, NB, din)
    w_full = jnp.zeros((din, NB * O_pad), f32)
    for n in range(NB):
        blk = w_o_nb[:, n, n * chunk:(n + 1) * chunk].T          # (chunk, O)
        w_full = w_full.at[n * chunk:(n + 1) * chunk,
                           n * O_pad:n * O_pad + O].set(blk)
    w_packed = (w_full.reshape(din, NB, n_ot, OT)
                      .transpose(2, 0, 1, 3)
                      .reshape(n_ot, din, NBO)
                      .astype(jnp.bfloat16))

    beta = jax.nn.sigmoid(tau_n.astype(f32))                     # (O, NB)
    alpha = jax.nn.sigmoid(tau_m.astype(f32))                    # (O,)

    def pack_nb_o(v):   # (NB, O) -> (n_ot, NB*OT), padded O lanes stay zero
        v = jnp.pad(v, ((0, 0), (0, O_pad - O)))
        return v.reshape(NB, n_ot, OT).transpose(1, 0, 2).reshape(n_ot, NBO)

    def pack_o(v):      # (O,) -> (n_ot, OT)
        return jnp.pad(v, (0, O_pad - O)).reshape(n_ot, OT)

    def pack_bo(v):     # (B, O) -> (n_ot, B_pad, OT)
        v = jnp.pad(v.astype(f32), ((0, B_pad - B), (0, O_pad - O)))
        return v.reshape(B_pad, n_ot, OT).transpose(1, 0, 2)

    b_pack = pack_nb_o(bias.astype(f32).reshape(O, NB).T)
    omb_pack = pack_nb_o((1.0 - beta).T)
    col_params = jnp.stack([b_pack, omb_pack], axis=1)[:, :, None, :]  # (n_ot,2,1,NBO)

    beta_rows = (jnp.pad(beta.T, ((0, 0), (0, O_pad - O)))
                 .reshape(NB, n_ot, OT).transpose(1, 0, 2))            # (n_ot,NB,OT)
    row_params = jnp.concatenate(
        [beta_rows, pack_o(alpha)[:, None, :], pack_o(1.0 - alpha)[:, None, :]],
        axis=1)[:, :, None, :]                                         # (n_ot,NB+2,1,OT)

    d0_t = jnp.pad(d_input0.astype(f32).transpose(2, 0, 1),
                   ((0, 0), (0, B_pad - B), (0, O_pad - O)))           # (NB,B_pad,O_pad)
    d0_tiles = d0_t.reshape(NB, B_pad, n_ot, OT).transpose(2, 0, 1, 3)
    init_state = jnp.concatenate(
        [d0_tiles, pack_bo(mem0)[:, None], pack_bo(spike0)[:, None]],
        axis=1)                                                        # (n_ot,NB+2,B_pad,OT)

    kernel = functools.partial(dh_dendritic_kernel,
                               float(v_threshold), NB, TT, B_pad, OT)

    grid_spec = pltpu.PrefetchScalarGridSpec(
        num_scalar_prefetch=0,
        grid=(n_ot, num_blocks),
        in_specs=[
            pl.BlockSpec((None, TT * B_pad, din), lambda o, tb: (tb, 0, 0)),     # x block
            pl.BlockSpec((None, din, NBO), lambda o, tb: (o, 0, 0)),             # weight
            pl.BlockSpec((None, 2, 1, NBO), lambda o, tb: (o, 0, 0, 0)),         # bias, 1-beta
            pl.BlockSpec((None, NB + 2, 1, OT), lambda o, tb: (o, 0, 0, 0)),     # beta, alpha, 1-alpha
            pl.BlockSpec((None, NB + 2, B_pad, OT), lambda o, tb: (o, 0, 0, 0)), # d0|mem0|spike0
        ],
        out_specs=(
            pl.BlockSpec((None, TT, B_pad, OT), lambda o, tb: (o, tb, 0, 0)),    # mem
            pl.BlockSpec((None, TT, B_pad, OT), lambda o, tb: (o, tb, 0, 0)),    # spike (bf16)
            pl.BlockSpec((None, NB, B_pad, OT), lambda o, tb: (o, 0, 0, 0)),     # final d
        ),
        scratch_shapes=[
            pltpu.VMEM((TT * B_pad, NBO), f32),   # per-block dense projection
            pltpu.VMEM((B_pad, OT), f32),         # mem carry
            pltpu.VMEM((B_pad, OT), f32),         # spike carry
        ],
    )

    mem_raw, spike_raw, d_raw = pl.pallas_call(
        kernel,
        grid_spec=grid_spec,
        out_shape=(
            jax.ShapeDtypeStruct((n_ot, T, B_pad, OT), f32),
            jax.ShapeDtypeStruct((n_ot, T, B_pad, OT), jnp.bfloat16),
            jax.ShapeDtypeStruct((n_ot, NB, B_pad, OT), f32),
        ),
        compiler_params=pltpu.CompilerParams(
            dimension_semantics=("parallel", "arbitrary"),
            vmem_limit_bytes=48 * 1024 * 1024),
    )(x_packed, w_packed, col_params, row_params, init_state)

    mem_seq = mem_raw.transpose(1, 2, 0, 3).reshape(T, B_pad, O_pad)[:, :B, :O]
    spike_seq = (spike_raw.astype(f32).transpose(1, 2, 0, 3)
                 .reshape(T, B_pad, O_pad)[:, :B, :O])
    d_final = d_raw.transpose(2, 0, 3, 1).reshape(B_pad, O_pad, NB)[:B, :O]
    return mem_seq, spike_seq, d_final


def reference_forward_seq(x_seq, weight, bias, tau_m, tau_n,
                          mem, spike, d_input, *, num_branches, v_threshold=1.0):
    """Pure-JAX reference matching the PyTorch forward, stepped over time."""
    T, B, input_dim = x_seq.shape
    O, NB = tau_n.shape
    pad = (input_dim // NB * NB + NB - input_dim) % NB
    beta = jax.nn.sigmoid(tau_n)
    alpha = jax.nn.sigmoid(tau_m)
    mems, spikes = [], []
    for t in range(T):
        k_input = jnp.pad(x_seq[t].astype(jnp.float32), ((0, 0), (0, pad)))
        dense_out = (k_input @ weight.T + bias).reshape(B, O, NB)
        d_input = beta * d_input + (1.0 - beta) * dense_out
        l_input = d_input.sum(axis=2)
        mem = mem * alpha + (1.0 - alpha) * l_input - v_threshold * spike
        spike = (mem - v_threshold > 0).astype(jnp.float32)
        mems.append(mem)
        spikes.append(spike)
    return jnp.stack(mems), jnp.stack(spikes), d_input


if __name__ == "__main__":
    # Small shapes consistent with the module: T=8 timesteps, batch=4,
    # input_dim=30 (padded to 32), output_dim=32, num_branches=4.
    T, B, input_dim, output_dim, num_branches = 8, 4, 30, 32, 4
    v_threshold = 1.0
    pad = (input_dim // num_branches * num_branches
           + num_branches - input_dim) % num_branches
    din = input_dim + pad

    key = jax.random.PRNGKey(0)
    k_w, k_b, k_tm, k_tn, k_mem, k_spk, k_x = jax.random.split(key, 7)

    bound = 1.0 / (din ** 0.5)
    weight = jax.random.uniform(k_w, (output_dim * num_branches, din),
                                minval=-bound, maxval=bound, dtype=jnp.float32)
    bias = jax.random.uniform(k_b, (output_dim * num_branches,),
                              minval=-bound, maxval=bound, dtype=jnp.float32)
    # create_mask() / apply_mask(): sparse block-diagonal dendritic connectivity
    chunk = din // num_branches
    row_branch = jnp.arange(output_dim * num_branches) % num_branches
    col_branch = jnp.arange(din) // chunk
    mask = (row_branch[:, None] == col_branch[None, :]).astype(jnp.float32)
    weight = weight * mask

    tau_m = jax.random.uniform(k_tm, (output_dim,), minval=0.0, maxval=4.0,
                               dtype=jnp.float32)
    tau_n = jax.random.uniform(k_tn, (output_dim, num_branches), minval=2.0,
                               maxval=6.0, dtype=jnp.float32)

    # set_neuron_state(batch_size): random mem/spike, zero dendritic input
    mem0 = jax.random.uniform(k_mem, (B, output_dim), dtype=jnp.float32)
    spike0 = jax.random.uniform(k_spk, (B, output_dim), dtype=jnp.float32)
    d_input0 = jnp.zeros((B, output_dim, num_branches), jnp.float32)

    # binary input spike train
    x_seq = (jax.random.uniform(k_x, (T, B, input_dim)) > 0.5).astype(jnp.float32)

    mem_k, spike_k, d_k = dh_dendritic_forward_seq(
        x_seq, weight, bias, tau_m, tau_n, mem0, spike0, d_input0,
        num_branches=num_branches, v_threshold=v_threshold)
    jax.block_until_ready((mem_k, spike_k, d_k))

    # reference with the same bf16-quantized weight so the compare is apples-to-apples
    weight_q = weight.astype(jnp.bfloat16).astype(jnp.float32)
    mem_r, spike_r, d_r = reference_forward_seq(
        x_seq, weight_q, bias, tau_m, tau_n, mem0, spike0, d_input0,
        num_branches=num_branches, v_threshold=v_threshold)

    assert jnp.allclose(mem_k, mem_r, atol=2e-4, rtol=2e-4), "mem mismatch"
    assert jnp.allclose(spike_k, spike_r, atol=1e-6), "spike mismatch"
    assert jnp.allclose(d_k, d_r, atol=2e-4, rtol=2e-4), "d_input mismatch"

    print("KERNEL_OK")
</pallas_src>

<mosaic_0001>
module attributes {stable_mosaic.version = 11 : i64} {
  func.func @dh_dendritic_kernel(%arg0: i32, %arg1: i32, %arg2: memref<1x64x32xbf16, #tpu.memory_space<vmem>>, %arg3: memref<1x32x512xbf16, #tpu.memory_space<vmem>>, %arg4: memref<1x2x1x512xf32, #tpu.memory_space<vmem>>, %arg5: memref<1x6x1x128xf32, #tpu.memory_space<vmem>>, %arg6: memref<1x6x8x128xf32, #tpu.memory_space<vmem>>, %arg7: memref<1x8x8x128xf32, #tpu.memory_space<vmem>>, %arg8: memref<1x8x8x128xbf16, #tpu.memory_space<vmem>>, %arg9: memref<1x4x8x128xf32, #tpu.memory_space<vmem>>, %arg10: memref<64x512xf32, #tpu.memory_space<vmem>>, %arg11: memref<8x128xf32, #tpu.memory_space<vmem>>, %arg12: memref<8x128xf32, #tpu.memory_space<vmem>>) attributes {dimension_semantics = [#tpu.dimension_semantics<parallel>, #tpu.dimension_semantics<arbitrary>], iteration_bounds = array<i64: 1, 1>, scalar_prefetch = 0 : i64, scratch_operands = 3 : i64, tpu.core_type = #tpu.core_type<tc>, window_params = [{transform_indices = @transform_0, window_bounds = array<i64: 1, 64, 32>}, {transform_indices = @transform_1, window_bounds = array<i64: 1, 32, 512>}, {transform_indices = @transform_2, window_bounds = array<i64: 1, 2, 1, 512>}, {transform_indices = @transform_3, window_bounds = array<i64: 1, 6, 1, 128>}, {transform_indices = @transform_4, window_bounds = array<i64: 1, 6, 8, 128>}, {transform_indices = @transform_5, window_bounds = array<i64: 1, 8, 8, 128>}, {transform_indices = @transform_6, window_bounds = array<i64: 1, 8, 8, 128>}, {transform_indices = @transform_7, window_bounds = array<i64: 1, 4, 8, 128>}]} {
    %c0_i32 = arith.constant 0 : i32
    %0 = arith.cmpi eq, %arg1, %c0_i32 : i32
    %1 = arith.extui %0 : i1 to i32
    %c0_i32_0 = arith.constant 0 : i32
    %2 = arith.cmpi ne, %1, %c0_i32_0 : i32
    scf.if %2 {
      %c0_457 = arith.constant 0 : index
      %c0_458 = arith.constant 0 : index
      %c0_459 = arith.constant 0 : index
      %c0_460 = arith.constant 0 : index
      %581 = vector.load %arg6[%c0_457, %c0_458, %c0_459, %c0_460] : memref<1x6x8x128xf32, #tpu.memory_space<vmem>>, vector<1x1x8x128xf32>
      %582 = vector.shape_cast %581 : vector<1x1x8x128xf32> to vector<8x128xf32>
      %c0_461 = arith.constant 0 : index
      %c0_462 = arith.constant 0 : index
      %c0_463 = arith.constant 0 : index
      %c0_464 = arith.constant 0 : index
      %583 = vector.load %arg9[%c0_461, %c0_462, %c0_463, %c0_464] : memref<1x4x8x128xf32, #tpu.memory_space<vmem>>, vector<1x1x8x128xf32>
      %584 = vector.shape_cast %583 : vector<1x1x8x128xf32> to vector<8x128xf32>
      %585 = vector.shape_cast %582 : vector<8x128xf32> to vector<1x1x8x128xf32>
      tpu.vector_store %arg9[%c0_461, %c0_462, %c0_463, %c0_464], %585 {strides = array<i32>} : memref<1x4x8x128xf32, #tpu.memory_space<vmem>>, vector<1x1x8x128xf32>,
      %c0_465 = arith.constant 0 : index
      %c1_466 = arith.constant 1 : index
      %c0_467 = arith.constant 0 : index
      %c0_468 = arith.constant 0 : index
      %586 = vector.load %arg6[%c0_465, %c1_466, %c0_467, %c0_468] : memref<1x6x8x128xf32, #tpu.memory_space<vmem>>, vector<1x1x8x128xf32>
      %587 = vector.shape_cast %586 : vector<1x1x8x128xf32> to vector<8x128xf32>
      %c0_469 = arith.constant 0 : index
      %c1_470 = arith.constant 1 : index
      %c0_471 = arith.constant 0 : index
      %c0_472 = arith.constant 0 : index
      %588 = vector.load %arg9[%c0_469, %c1_470, %c0_471, %c0_472] : memref<1x4x8x128xf32, #tpu.memory_space<vmem>>, vector<1x1x8x128xf32>
      %589 = vector.shape_cast %588 : vector<1x1x8x128xf32> to vector<8x128xf32>
      %590 = vector.shape_cast %587 : vector<8x128xf32> to vector<1x1x8x128xf32>
      tpu.vector_store %arg9[%c0_469, %c1_470, %c0_471, %c0_472], %590 {strides = array<i32>} : memref<1x4x8x128xf32, #tpu.memory_space<vmem>>, vector<1x1x8x128xf32>,
      %c0_473 = arith.constant 0 : index
      %c2_474 = arith.constant 2 : index
      %c0_475 = arith.constant 0 : index
      %c0_476 = arith.constant 0 : index
      %591 = vector.load %arg6[%c0_473, %c2_474, %c0_475, %c0_476] : memref<1x6x8x128xf32, #tpu.memory_space<vmem>>, vector<1x1x8x128xf32>
      %592 = vector.shape_cast %591 : vector<1x1x8x128xf32> to vector<8x128xf32>
      %c0_477 = arith.constant 0 : index
      %c2_478 = arith.constant 2 : index
      %c0_479 = arith.constant 0 : index
      %c0_480 = arith.constant 0 : index
      %593 = vector.load %arg9[%c0_477, %c2_478, %c0_479, %c0_480] : memref<1x4x8x128xf32, #tpu.memory_space<vmem>>, vector<1x1x8x128xf32>
      %594 = vector.shape_cast %593 : vector<1x1x8x128xf32> to vector<8x128xf32>
      %595 = vector.shape_cast %592 : vector<8x128xf32> to vector<1x1x8x128xf32>
      tpu.vector_store %arg9[%c0_477, %c2_478, %c0_479, %c0_480], %595 {strides = array<i32>} : memref<1x4x8x128xf32, #tpu.memory_space<vmem>>, vector<1x1x8x128xf32>,
      %c0_481 = arith.constant 0 : index
      %c3_482 = arith.constant 3 : index
      %c0_483 = arith.constant 0 : index
      %c0_484 = arith.constant 0 : index
      %596 = vector.load %arg6[%c0_481, %c3_482, %c0_483, %c0_484] : memref<1x6x8x128xf32, #tpu.memory_space<vmem>>, vector<1x1x8x128xf32>
      %597 = vector.shape_cast %596 : vector<1x1x8x128xf32> to vector<8x128xf32>
      %c0_485 = arith.constant 0 : index
      %c3_486 = arith.constant 3 : index
      %c0_487 = arith.constant 0 : index
      %c0_488 = arith.constant 0 : index
      %598 = vector.load %arg9[%c0_485, %c3_486, %c0_487, %c0_488] : memref<1x4x8x128xf32, #tpu.memory_space<vmem>>, vector<1x1x8x128xf32>
      %599 = vector.shape_cast %598 : vector<1x1x8x128xf32> to vector<8x128xf32>
      %600 = vector.shape_cast %597 : vector<8x128xf32> to vector<1x1x8x128xf32>
      tpu.vector_store %arg9[%c0_485, %c3_486, %c0_487, %c0_488], %600 {strides = array<i32>} : memref<1x4x8x128xf32, #tpu.memory_space<vmem>>, vector<1x1x8x128xf32>,
      %c0_489 = arith.constant 0 : index
      %c4_490 = arith.constant 4 : index
      %c0_491 = arith.constant 0 : index
      %c0_492 = arith.constant 0 : index
      %601 = vector.load %arg6[%c0_489, %c4_490, %c0_491, %c0_492] : memref<1x6x8x128xf32, #tpu.memory_space<vmem>>, vector<1x1x8x128xf32>
      %602 = vector.shape_cast %601 : vector<1x1x8x128xf32> to vector<8x128xf32>
      %c0_493 = arith.constant 0 : index
      %c0_494 = arith.constant 0 : index
      %603 = vector.load %arg11[%c0_493, %c0_494] : memref<8x128xf32, #tpu.memory_space<vmem>>, vector<8x128xf32>
      tpu.vector_store %arg11[%c0_493, %c0_494], %602 {strides = array<i32>} : memref<8x128xf32, #tpu.memory_space<vmem>>, vector<8x128xf32>,
      %c0_495 = arith.constant 0 : index
      %c5_496 = arith.constant 5 : index
      %c0_497 = arith.constant 0 : index
      %c0_498 = arith.constant 0 : index
      %604 = vector.load %arg6[%c0_495, %c5_496, %c0_497, %c0_498] : memref<1x6x8x128xf32, #tpu.memory_space<vmem>>, vector<1x1x8x128xf32>
      %605 = vector.shape_cast %604 : vector<1x1x8x128xf32> to vector<8x128xf32>
      %c0_499 = arith.constant 0 : index
      %c0_500 = arith.constant 0 : index
      %606 = vector.load %arg12[%c0_499, %c0_500] : memref<8x128xf32, #tpu.memory_space<vmem>>, vector<8x128xf32>
      tpu.vector_store %arg12[%c0_499, %c0_500], %605 {strides = array<i32>} : memref<8x128xf32, #tpu.memory_space<vmem>>, vector<8x128xf32>,
    } else {
    }
    %c0 = arith.constant 0 : index
    %c0_1 = arith.constant 0 : index
    %c0_2 = arith.constant 0 : index
    %3 = vector.load %arg2[%c0, %c0_1, %c0_2] : memref<1x64x32xbf16, #tpu.memory_space<vmem>>, vector<1x64x32xbf16>
    %4 = vector.shape_cast %3 : vector<1x64x32xbf16> to vector<64x32xbf16>
    %c0_3 = arith.constant 0 : index
    %c0_4 = arith.constant 0 : index
    %c0_5 = arith.constant 0 : index
    %5 = vector.load %arg3[%c0_3, %c0_4, %c0_5] : memref<1x32x512xbf16, #tpu.memory_space<vmem>>, vector<1x32x512xbf16>
    %6 = vector.shape_cast %5 : vector<1x32x512xbf16> to vector<32x512xbf16>
    %cst = arith.constant dense<0.000000e+00> : vector<64x512xf32>
    %7 = tpu.matmul %4, %6, %cst {dimension_numbers = #tpu.dot_dimension_numbers<[1], [0], [0], [1], [0, 0, 1, 1], [], []>} : vector<64x32xbf16>, vector<32x512xbf16>, vector<64x512xf32> -> vector<64x512xf32>
    %c0_6 = arith.constant 0 : index
    %c0_7 = arith.constant 0 : index
    %c0_8 = arith.constant 0 : index
    %c0_9 = arith.constant 0 : index
    %8 = vector.load %arg4[%c0_6, %c0_7, %c0_8, %c0_9] : memref<1x2x1x512xf32, #tpu.memory_space<vmem>>, vector<1x1x1x512xf32>
    %9 = vector.shape_cast %8 : vector<1x1x1x512xf32> to vector<1x512xf32>
    %10 = vector.broadcast %9 : vector<1x512xf32> to vector<64x512xf32>
    %11 = arith.addf %7, %10 : vector<64x512xf32>
    %c0_10 = arith.constant 0 : index
    %c1 = arith.constant 1 : index
    %c0_11 = arith.constant 0 : index
    %c0_12 = arith.constant 0 : index
    %12 = vector.load %arg4[%c0_10, %c1, %c0_11, %c0_12] : memref<1x2x1x512xf32, #tpu.memory_space<vmem>>, vector<1x1x1x512xf32>
    %13 = vector.shape_cast %12 : vector<1x1x1x512xf32> to vector<1x512xf32>
    %14 = vector.broadcast %13 : vector<1x512xf32> to vector<64x512xf32>
    %15 = arith.mulf %11, %14 : vector<64x512xf32>
    %c0_13 = arith.constant 0 : index
    %c0_14 = arith.constant 0 : index
    %16 = vector.load %arg10[%c0_13, %c0_14] : memref<64x512xf32, #tpu.memory_space<vmem>>, vector<64x512xf32>
    tpu.vector_store %arg10[%c0_13, %c0_14], %15 {strides = array<i32>} : memref<64x512xf32, #tpu.memory_space<vmem>>, vector<64x512xf32>,
    %c0_15 = arith.constant 0 : index
    %c4 = arith.constant 4 : index
    %c0_16 = arith.constant 0 : index
    %c0_17 = arith.constant 0 : index
    %17 = vector.load %arg5[%c0_15, %c4, %c0_16, %c0_17] : memref<1x6x1x128xf32, #tpu.memory_space<vmem>>, vector<1x1x1x128xf32>
    %18 = vector.shape_cast %17 : vector<1x1x1x128xf32> to vector<1x128xf32>
    %c0_18 = arith.constant 0 : index
    %c5 = arith.constant 5 : index
    %c0_19 = arith.constant 0 : index
    %c0_20 = arith.constant 0 : index
    %19 = vector.load %arg5[%c0_18, %c5, %c0_19, %c0_20] : memref<1x6x1x128xf32, #tpu.memory_space<vmem>>, vector<1x1x1x128xf32>
    %20 = vector.shape_cast %19 : vector<1x1x1x128xf32> to vector<1x128xf32>
    %c0_21 = arith.constant 0 : index
    %c0_22 = arith.constant 0 : index
    %c0_23 = arith.constant 0 : index
    %c0_24 = arith.constant 0 : index
    %21 = vector.load %arg5[%c0_21, %c0_22, %c0_23, %c0_24] : memref<1x6x1x128xf32, #tpu.memory_space<vmem>>, vector<1x1x1x128xf32>
    %22 = vector.shape_cast %21 : vector<1x1x1x128xf32> to vector<1x128xf32>
    %c0_25 = arith.constant 0 : index
    %c1_26 = arith.constant 1 : index
    %c0_27 = arith.constant 0 : index
    %c0_28 = arith.constant 0 : index
    %23 = vector.load %arg5[%c0_25, %c1_26, %c0_27, %c0_28] : memref<1x6x1x128xf32, #tpu.memory_space<vmem>>, vector<1x1x1x128xf32>
    %24 = vector.shape_cast %23 : vector<1x1x1x128xf32> to vector<1x128xf32>
    %c0_29 = arith.constant 0 : index
    %c2 = arith.constant 2 : index
    %c0_30 = arith.constant 0 : index
    %c0_31 = arith.constant 0 : index
    %25 = vector.load %arg5[%c0_29, %c2, %c0_30, %c0_31] : memref<1x6x1x128xf32, #tpu.memory_space<vmem>>, vector<1x1x1x128xf32>
    %26 = vector.shape_cast %25 : vector<1x1x1x128xf32> to vector<1x128xf32>
    %c0_32 = arith.constant 0 : index
    %c3 = arith.constant 3 : index
    %c0_33 = arith.constant 0 : index
    %c0_34 = arith.constant 0 : index
    %27 = vector.load %arg5[%c0_32, %c3, %c0_33, %c0_34] : memref<1x6x1x128xf32, #tpu.memory_space<vmem>>, vector<1x1x1x128xf32>
    %28 = vector.shape_cast %27 : vector<1x1x1x128xf32> to vector<1x128xf32>
    %c0_i32_35 = arith.constant 0 : i32
    %c8_i32 = arith.constant 8 : i32
    %29 = arith.muli %c0_i32_35, %c8_i32 : i32
    %c0_36 = arith.constant 0 : index
    %c0_37 = arith.constant 0 : index
    %c0_38 = arith.constant 0 : index
    %c0_39 = arith.constant 0 : index
    %30 = vector.load %arg9[%c0_36, %c0_37, %c0_38, %c0_39] : memref<1x4x8x128xf32, #tpu.memory_space<vmem>>, vector<1x1x8x128xf32>
    %31 = vector.shape_cast %30 : vector<1x1x8x128xf32> to vector<8x128xf32>
    %32 = vector.broadcast %22 : vector<1x128xf32> to vector<8x128xf32>
    %33 = arith.mulf %32, %31 : vector<8x128xf32>
    %34 = arith.index_cast %29 : i32 to index
    %c0_40 = arith.constant 0 : index
    %35 = vector.load %arg10[%34, %c0_40] : memref<64x512xf32, #tpu.memory_space<vmem>>, vector<8x128xf32>
    %36 = arith.addf %33, %35 : vector<8x128xf32>
    %c0_41 = arith.constant 0 : index
    %c0_42 = arith.constant 0 : index
    %c0_43 = arith.constant 0 : index
    %c0_44 = arith.constant 0 : index
    %37 = vector.load %arg9[%c0_41, %c0_42, %c0_43, %c0_44] : memref<1x4x8x128xf32, #tpu.memory_space<vmem>>, vector<1x1x8x128xf32>
    %38 = vector.shape_cast %37 : vector<1x1x8x128xf32> to vector<8x128xf32>
    %39 = vector.shape_cast %36 : vector<8x128xf32> to vector<1x1x8x128xf32>
    tpu.vector_store %arg9[%c0_41, %c0_42, %c0_43, %c0_44], %39 {strides = array<i32>} : memref<1x4x8x128xf32, #tpu.memory_space<vmem>>, vector<1x1x8x128xf32>,
    %c0_45 = arith.constant 0 : index
    %c1_46 = arith.constant 1 : index
    %c0_47 = arith.constant 0 : index
    %c0_48 = arith.constant 0 : index
    %40 = vector.load %arg9[%c0_45, %c1_46, %c0_47, %c0_48] : memref<1x4x8x128xf32, #tpu.memory_space<vmem>>, vector<1x1x8x128xf32>
    %41 = vector.shape_cast %40 : vector<1x1x8x128xf32> to vector<8x128xf32>
    %42 = vector.broadcast %24 : vector<1x128xf32> to vector<8x128xf32>
    %43 = arith.mulf %42, %41 : vector<8x128xf32>
    %44 = arith.index_cast %29 : i32 to index
    %c128 = arith.constant 128 : index
    %45 = vector.load %arg10[%44, %c128] : memref<64x512xf32, #tpu.memory_space<vmem>>, vector<8x128xf32>
    %46 = arith.addf %43, %45 : vector<8x128xf32>
    %c0_49 = arith.constant 0 : index
    %c1_50 = arith.constant 1 : index
    %c0_51 = arith.constant 0 : index
    %c0_52 = arith.constant 0 : index
    %47 = vector.load %arg9[%c0_49, %c1_50, %c0_51, %c0_52] : memref<1x4x8x128xf32, #tpu.memory_space<vmem>>, vector<1x1x8x128xf32>
    %48 = vector.shape_cast %47 : vector<1x1x8x128xf32> to vector<8x128xf32>
    %49 = vector.shape_cast %46 : vector<8x128xf32> to vector<1x1x8x128xf32>
    tpu.vector_store %arg9[%c0_49, %c1_50, %c0_51, %c0_52], %49 {strides = array<i32>} : memref<1x4x8x128xf32, #tpu.memory_space<vmem>>, vector<1x1x8x128xf32>,
    %50 = arith.addf %36, %46 : vector<8x128xf32>
    %c0_53 = arith.constant 0 : index
    %c2_54 = arith.constant 2 : index
    %c0_55 = arith.constant 0 : index
    %c0_56 = arith.constant 0 : index
    %51 = vector.load %arg9[%c0_53, %c2_54, %c0_55, %c0_56] : memref<1x4x8x128xf32, #tpu.memory_space<vmem>>, vector<1x1x8x128xf32>
    %52 = vector.shape_cast %51 : vector<1x1x8x128xf32> to vector<8x128xf32>
    %53 = vector.broadcast %26 : vector<1x128xf32> to vector<8x128xf32>
    %54 = arith.mulf %53, %52 : vector<8x128xf32>
    %55 = arith.index_cast %29 : i32 to index
    %c256 = arith.constant 256 : index
    %56 = vector.load %arg10[%55, %c256] : memref<64x512xf32, #tpu.memory_space<vmem>>, vector<8x128xf32>
    %57 = arith.addf %54, %56 : vector<8x128xf32>
    %c0_57 = arith.constant 0 : index
    %c2_58 = arith.constant 2 : index
    %c0_59 = arith.constant 0 : index
    %c0_60 = arith.constant 0 : index
    %58 = vector.load %arg9[%c0_57, %c2_58, %c0_59, %c0_60] : memref<1x4x8x128xf32, #tpu.memory_space<vmem>>, vector<1x1x8x128xf32>
    %59 = vector.shape_cast %58 : vector<1x1x8x128xf32> to vector<8x128xf32>
    %60 = vector.shape_cast %57 : vector<8x128xf32> to vector<1x1x8x128xf32>
    tpu.vector_store %arg9[%c0_57, %c2_58, %c0_59, %c0_60], %60 {strides = array<i32>} : memref<1x4x8x128xf32, #tpu.memory_space<vmem>>, vector<1x1x8x128xf32>,
    %61 = arith.addf %50, %57 : vector<8x128xf32>
    %c0_61 = arith.constant 0 : index
    %c3_62 = arith.constant 3 : index
    %c0_63 = arith.constant 0 : index
    %c0_64 = arith.constant 0 : index
    %62 = vector.load %arg9[%c0_61, %c3_62, %c0_63, %c0_64] : memref<1x4x8x128xf32, #tpu.memory_space<vmem>>, vector<1x1x8x128xf32>
    %63 = vector.shape_cast %62 : vector<1x1x8x128xf32> to vector<8x128xf32>
    %64 = vector.broadcast %28 : vector<1x128xf32> to vector<8x128xf32>
    %65 = arith.mulf %64, %63 : vector<8x128xf32>
    %66 = arith.index_cast %29 : i32 to index
    %c384 = arith.constant 384 : index
    %67 = vector.load %arg10[%66, %c384] : memref<64x512xf32, #tpu.memory_space<vmem>>, vector<8x128xf32>
    %68 = arith.addf %65, %67 : vector<8x128xf32>
    %c0_65 = arith.constant 0 : index
    %c3_66 = arith.constant 3 : index
    %c0_67 = arith.constant 0 : index
    %c0_68 = arith.constant 0 : index
    %69 = vector.load %arg9[%c0_65, %c3_66, %c0_67, %c0_68] : memref<1x4x8x128xf32, #tpu.memory_space<vmem>>, vector<1x1x8x128xf32>
    %70 = vector.shape_cast %69 : vector<1x1x8x128xf32> to vector<8x128xf32>
    %71 = vector.shape_cast %68 : vector<8x128xf32> to vector<1x1x8x128xf32>
    tpu.vector_store %arg9[%c0_65, %c3_66, %c0_67, %c0_68], %71 {strides = array<i32>} : memref<1x4x8x128xf32, #tpu.memory_space<vmem>>, vector<1x1x8x128xf32>,
    %72 = arith.addf %61, %68 : vector<8x128xf32>
    %c0_69 = arith.constant 0 : index
    %c0_70 = arith.constant 0 : index
    %73 = vector.load %arg11[%c0_69, %c0_70] : memref<8x128xf32, #tpu.memory_space<vmem>>, vector<8x128xf32>
    %74 = vector.broadcast %18 : vector<1x128xf32> to vector<8x128xf32>
    %75 = arith.mulf %74, %73 : vector<8x128xf32>
    %76 = vector.broadcast %20 : vector<1x128xf32> to vector<8x128xf32>
    %77 = arith.mulf %76, %72 : vector<8x128xf32>
    %78 = arith.addf %75, %77 : vector<8x128xf32>
    %c0_71 = arith.constant 0 : index
    %c0_72 = arith.constant 0 : index
    %79 = vector.load %arg12[%c0_71, %c0_72] : memref<8x128xf32, #tpu.memory_space<vmem>>, vector<8x128xf32>
    %cst_73 = arith.constant 1.000000e+00 : f32
    %80 = vector.broadcast %cst_73 : f32 to vector<8x128xf32>
    %81 = arith.mulf %80, %79 : vector<8x128xf32>
    %82 = arith.subf %78, %81 : vector<8x128xf32>
    %cst_74 = arith.constant 1.000000e+00 : f32
    %83 = vector.broadcast %cst_74 : f32 to vector<8x128xf32>
    %84 = arith.cmpf ogt, %82, %83 : vector<8x128xf32>
    %85 = arith.extui %84 : vector<8x128xi1> to vector<8x128xi32>
    %86 = arith.sitofp %85 : vector<8x128xi32> to vector<8x128xf32>
    %c0_75 = arith.constant 0 : index
    %c0_76 = arith.constant 0 : index
    %87 = vector.load %arg11[%c0_75, %c0_76] : memref<8x128xf32, #tpu.memory_space<vmem>>, vector<8x128xf32>
    tpu.vector_store %arg11[%c0_75, %c0_76], %82 {strides = array<i32>} : memref<8x128xf32, #tpu.memory_space<vmem>>, vector<8x128xf32>,
    %c0_77 = arith.constant 0 : index
    %c0_78 = arith.constant 0 : index
    %88 = vector.load %arg12[%c0_77, %c0_78] : memref<8x128xf32, #tpu.memory_space<vmem>>, vector<8x128xf32>
    tpu.vector_store %arg12[%c0_77, %c0_78], %86 {strides = array<i32>} : memref<8x128xf32, #tpu.memory_space<vmem>>, vector<8x128xf32>,
    %c0_79 = arith.constant 0 : index
    %89 = arith.index_cast %c0_i32_35 : i32 to index
    %c0_80 = arith.constant 0 : index
    %c0_81 = arith.constant 0 : index
    %90 = vector.load %arg7[%c0_79, %89, %c0_80, %c0_81] : memref<1x8x8x128xf32, #tpu.memory_space<vmem>>, vector<1x1x8x128xf32>
    %91 = vector.shape_cast %90 : vector<1x1x8x128xf32> to vector<8x128xf32>
    %92 = vector.shape_cast %82 : vector<8x128xf32> to vector<1x1x8x128xf32>
    tpu.vector_store %arg7[%c0_79, %89, %c0_80, %c0_81], %92 {strides = array<i32>} : memref<1x8x8x128xf32, #tpu.memory_space<vmem>>, vector<1x1x8x128xf32>,
    %93 = arith.truncf %86 : vector<8x128xf32> to vector<8x128xbf16>
    %c0_82 = arith.constant 0 : index
    %94 = arith.index_cast %c0_i32_35 : i32 to index
    %c0_83 = arith.constant 0 : index
    %c0_84 = arith.constant 0 : index
    %95 = vector.load %arg8[%c0_82, %94, %c0_83, %c0_84] : memref<1x8x8x128xbf16, #tpu.memory_space<vmem>>, vector<1x1x8x128xbf16>
    %96 = vector.shape_cast %95 : vector<1x1x8x128xbf16> to vector<8x128xbf16>
    %97 = vector.shape_cast %93 : vector<8x128xbf16> to vector<1x1x8x128xbf16>
    tpu.vector_store %arg8[%c0_82, %94, %c0_83, %c0_84], %97 {strides = array<i32>} : memref<1x8x8x128xbf16, #tpu.memory_space<vmem>>, vector<1x1x8x128xbf16>,
    %c1_i32 = arith.constant 1 : i32
    %c8_i32_85 = arith.constant 8 : i32
    %98 = arith.muli %c1_i32, %c8_i32_85 : i32
    %c0_86 = arith.constant 0 : index
    %c0_87 = arith.constant 0 : index
    %c0_88 = arith.constant 0 : index
    %c0_89 = arith.constant 0 : index
    %99 = vector.load %arg9[%c0_86, %c0_87, %c0_88, %c0_89] : memref<1x4x8x128xf32, #tpu.memory_space<vmem>>, vector<1x1x8x128xf32>
    %100 = vector.shape_cast %99 : vector<1x1x8x128xf32> to vector<8x128xf32>
    %101 = vector.broadcast %22 : vector<1x128xf32> to vector<8x128xf32>
    %102 = arith.mulf %101, %100 : vector<8x128xf32>
    %103 = arith.index_cast %98 : i32 to index
    %c0_90 = arith.constant 0 : index
    %104 = vector.load %arg10[%103, %c0_90] : memref<64x512xf32, #tpu.memory_space<vmem>>, vector<8x128xf32>
    %105 = arith.addf %102, %104 : vector<8x128xf32>
    %c0_91 = arith.constant 0 : index
    %c0_92 = arith.constant 0 : index
    %c0_93 = arith.constant 0 : index
    %c0_94 = arith.constant 0 : index
    %106 = vector.load %arg9[%c0_91, %c0_92, %c0_93, %c0_94] : memref<1x4x8x128xf32, #tpu.memory_space<vmem>>, vector<1x1x8x128xf32>
    %107 = vector.shape_cast %106 : vector<1x1x8x128xf32> to vector<8x128xf32>
    %108 = vector.shape_cast %105 : vector<8x128xf32> to vector<1x1x8x128xf32>
    tpu.vector_store %arg9[%c0_91, %c0_92, %c0_93, %c0_94], %108 {strides = array<i32>} : memref<1x4x8x128xf32, #tpu.memory_space<vmem>>, vector<1x1x8x128xf32>,
    %c0_95 = arith.constant 0 : index
    %c1_96 = arith.constant 1 : index
    %c0_97 = arith.constant 0 : index
    %c0_98 = arith.constant 0 : index
    %109 = vector.load %arg9[%c0_95, %c1_96, %c0_97, %c0_98] : memref<1x4x8x128xf32, #tpu.memory_space<vmem>>, vector<1x1x8x128xf32>
    %110 = vector.shape_cast %109 : vector<1x1x8x128xf32> to vector<8x128xf32>
    %111 = vector.broadcast %24 : vector<1x128xf32> to vector<8x128xf32>
    %112 = arith.mulf %111, %110 : vector<8x128xf32>
    %113 = arith.index_cast %98 : i32 to index
    %c128_99 = arith.constant 128 : index
    %114 = vector.load %arg10[%113, %c128_99] : memref<64x512xf32, #tpu.memory_space<vmem>>, vector<8x128xf32>
    %115 = arith.addf %112, %114 : vector<8x128xf32>
    %c0_100 = arith.constant 0 : index
    %c1_101 = arith.constant 1 : index
    %c0_102 = arith.constant 0 : index
    %c0_103 = arith.constant 0 : index
    %116 = vector.load %arg9[%c0_100, %c1_101, %c0_102, %c0_103] : memref<1x4x8x128xf32, #tpu.memory_space<vmem>>, vector<1x1x8x128xf32>
    %117 = vector.shape_cast %116 : vector<1x1x8x128xf32> to vector<8x128xf32>
    %118 = vector.shape_cast %115 : vector<8x128xf32> to vector<1x1x8x128xf32>
    tpu.vector_store %arg9[%c0_100, %c1_101, %c0_102, %c0_103], %118 {strides = array<i32>} : memref<1x4x8x128xf32, #tpu.memory_space<vmem>>, vector<1x1x8x128xf32>,
    %119 = arith.addf %105, %115 : vector<8x128xf32>
    %c0_104 = arith.constant 0 : index
    %c2_105 = arith.constant 2 : index
    %c0_106 = arith.constant 0 : index
    %c0_107 = arith.constant 0 : index
    %120 = vector.load %arg9[%c0_104, %c2_105, %c0_106, %c0_107] : memref<1x4x8x128xf32, #tpu.memory_space<vmem>>, vector<1x1x8x128xf32>
    %121 = vector.shape_cast %120 : vector<1x1x8x128xf32> to vector<8x128xf32>
    %122 = vector.broadcast %26 : vector<1x128xf32> to vector<8x128xf32>
    %123 = arith.mulf %122, %121 : vector<8x128xf32>
    %124 = arith.index_cast %98 : i32 to index
    %c256_108 = arith.constant 256 : index
    %125 = vector.load %arg10[%124, %c256_108] : memref<64x512xf32, #tpu.memory_space<vmem>>, vector<8x128xf32>
    %126 = arith.addf %123, %125 : vector<8x128xf32>
    %c0_109 = arith.constant 0 : index
    %c2_110 = arith.constant 2 : index
    %c0_111 = arith.constant 0 : index
    %c0_112 = arith.constant 0 : index
    %127 = vector.load %arg9[%c0_109, %c2_110, %c0_111, %c0_112] : memref<1x4x8x128xf32, #tpu.memory_space<vmem>>, vector<1x1x8x128xf32>
    %128 = vector.shape_cast %127 : vector<1x1x8x128xf32> to vector<8x128xf32>
    %129 = vector.shape_cast %126 : vector<8x128xf32> to vector<1x1x8x128xf32>
    tpu.vector_store %arg9[%c0_109, %c2_110, %c0_111, %c0_112], %129 {strides = array<i32>} : memref<1x4x8x128xf32, #tpu.memory_space<vmem>>, vector<1x1x8x128xf32>,
    %130 = arith.addf %119, %126 : vector<8x128xf32>
    %c0_113 = arith.constant 0 : index
    %c3_114 = arith.constant 3 : index
    %c0_115 = arith.constant 0 : index
    %c0_116 = arith.constant 0 : index
    %131 = vector.load %arg9[%c0_113, %c3_114, %c0_115, %c0_116] : memref<1x4x8x128xf32, #tpu.memory_space<vmem>>, vector<1x1x8x128xf32>
    %132 = vector.shape_cast %131 : vector<1x1x8x128xf32> to vector<8x128xf32>
    %133 = vector.broadcast %28 : vector<1x128xf32> to vector<8x128xf32>
    %134 = arith.mulf %133, %132 : vector<8x128xf32>
    %135 = arith.index_cast %98 : i32 to index
    %c384_117 = arith.constant 384 : index
    %136 = vector.load %arg10[%135, %c384_117] : memref<64x512xf32, #tpu.memory_space<vmem>>, vector<8x128xf32>
    %137 = arith.addf %134, %136 : vector<8x128xf32>
    %c0_118 = arith.constant 0 : index
    %c3_119 = arith.constant 3 : index
    %c0_120 = arith.constant 0 : index
    %c0_121 = arith.constant 0 : index
    %138 = vector.load %arg9[%c0_118, %c3_119, %c0_120, %c0_121] : memref<1x4x8x128xf32, #tpu.memory_space<vmem>>, vector<1x1x8x128xf32>
    %139 = vector.shape_cast %138 : vector<1x1x8x128xf32> to vector<8x128xf32>
    %140 = vector.shape_cast %137 : vector<8x128xf32> to vector<1x1x8x128xf32>
    tpu.vector_store %arg9[%c0_118, %c3_119, %c0_120, %c0_121], %140 {strides = array<i32>} : memref<1x4x8x128xf32, #tpu.memory_space<vmem>>, vector<1x1x8x128xf32>,
    %141 = arith.addf %130, %137 : vector<8x128xf32>
    %c0_122 = arith.constant 0 : index
    %c0_123 = arith.constant 0 : index
    %142 = vector.load %arg11[%c0_122, %c0_123] : memref<8x128xf32, #tpu.memory_space<vmem>>, vector<8x128xf32>
    %143 = vector.broadcast %18 : vector<1x128xf32> to vector<8x128xf32>
    %144 = arith.mulf %143, %142 : vector<8x128xf32>
    %145 = vector.broadcast %20 : vector<1x128xf32> to vector<8x128xf32>
    %146 = arith.mulf %145, %141 : vector<8x128xf32>
    %147 = arith.addf %144, %146 : vector<8x128xf32>
    %c0_124 = arith.constant 0 : index
    %c0_125 = arith.constant 0 : index
    %148 = vector.load %arg12[%c0_124, %c0_125] : memref<8x128xf32, #tpu.memory_space<vmem>>, vector<8x128xf32>
    %cst_126 = arith.constant 1.000000e+00 : f32
    %149 = vector.broadcast %cst_126 : f32 to vector<8x128xf32>
    %150 = arith.mulf %149, %148 : vector<8x128xf32>
    %151 = arith.subf %147, %150 : vector<8x128xf32>
    %cst_127 = arith.constant 1.000000e+00 : f32
    %152 = vector.broadcast %cst_127 : f32 to vector<8x128xf32>
    %153 = arith.cmpf ogt, %151, %152 : vector<8x128xf32>
    %154 = arith.extui %153 : vector<8x128xi1> to vector<8x128xi32>
    %155 = arith.sitofp %154 : vector<8x128xi32> to vector<8x128xf32>
    %c0_128 = arith.constant 0 : index
    %c0_129 = arith.constant 0 : index
    %156 = vector.load %arg11[%c0_128, %c0_129] : memref<8x128xf32, #tpu.memory_space<vmem>>, vector<8x128xf32>
    tpu.vector_store %arg11[%c0_128, %c0_129], %151 {strides = array<i32>} : memref<8x128xf32, #tpu.memory_space<vmem>>, vector<8x128xf32>,
    %c0_130 = arith.constant 0 : index
    %c0_131 = arith.constant 0 : index
    %157 = vector.load %arg12[%c0_130, %c0_131] : memref<8x128xf32, #tpu.memory_space<vmem>>, vector<8x128xf32>
    tpu.vector_store %arg12[%c0_130, %c0_131], %155 {strides = array<i32>} : memref<8x128xf32, #tpu.memory_space<vmem>>, vector<8x128xf32>,
    %c0_132 = arith.constant 0 : index
    %158 = arith.index_cast %c1_i32 : i32 to index
    %c0_133 = arith.constant 0 : index
    %c0_134 = arith.constant 0 : index
    %159 = vector.load %arg7[%c0_132, %158, %c0_133, %c0_134] : memref<1x8x8x128xf32, #tpu.memory_space<vmem>>, vector<1x1x8x128xf32>
    %160 = vector.shape_cast %159 : vector<1x1x8x128xf32> to vector<8x128xf32>
    %161 = vector.shape_cast %151 : vector<8x128xf32> to vector<1x1x8x128xf32>
    tpu.vector_store %arg7[%c0_132, %158, %c0_133, %c0_134], %161 {strides = array<i32>} : memref<1x8x8x128xf32, #tpu.memory_space<vmem>>, vector<1x1x8x128xf32>,
    %162 = arith.truncf %155 : vector<8x128xf32> to vector<8x128xbf16>
    %c0_135 = arith.constant 0 : index
    %163 = arith.index_cast %c1_i32 : i32 to index
    %c0_136 = arith.constant 0 : index
    %c0_137 = arith.constant 0 : index
    %164 = vector.load %arg8[%c0_135, %163, %c0_136, %c0_137] : memref<1x8x8x128xbf16, #tpu.memory_space<vmem>>, vector<1x1x8x128xbf16>
    %165 = vector.shape_cast %164 : vector<1x1x8x128xbf16> to vector<8x128xbf16>
    %166 = vector.shape_cast %162 : vector<8x128xbf16> to vector<1x1x8x128xbf16>
    tpu.vector_store %arg8[%c0_135, %163, %c0_136, %c0_137], %166 {strides = array<i32>} : memref<1x8x8x128xbf16, #tpu.memory_space<vmem>>, vector<1x1x8x128xbf16>,
    %c2_i32 = arith.constant 2 : i32
    %c8_i32_138 = arith.constant 8 : i32
    %167 = arith.muli %c2_i32, %c8_i32_138 : i32
    %c0_139 = arith.constant 0 : index
    %c0_140 = arith.constant 0 : index
    %c0_141 = arith.constant 0 : index
    %c0_142 = arith.constant 0 : index
    %168 = vector.load %arg9[%c0_139, %c0_140, %c0_141, %c0_142] : memref<1x4x8x128xf32, #tpu.memory_space<vmem>>, vector<1x1x8x128xf32>
    %169 = vector.shape_cast %168 : vector<1x1x8x128xf32> to vector<8x128xf32>
    %170 = vector.broadcast %22 : vector<1x128xf32> to vector<8x128xf32>
    %171 = arith.mulf %170, %169 : vector<8x128xf32>
    %172 = arith.index_cast %167 : i32 to index
    %c0_143 = arith.constant 0 : index
    %173 = vector.load %arg10[%172, %c0_143] : memref<64x512xf32, #tpu.memory_space<vmem>>, vector<8x128xf32>
    %174 = arith.addf %171, %173 : vector<8x128xf32>
    %c0_144 = arith.constant 0 : index
    %c0_145 = arith.constant 0 : index
    %c0_146 = arith.constant 0 : index
    %c0_147 = arith.constant 0 : index
    %175 = vector.load %arg9[%c0_144, %c0_145, %c0_146, %c0_147] : memref<1x4x8x128xf32, #tpu.memory_space<vmem>>, vector<1x1x8x128xf32>
    %176 = vector.shape_cast %175 : vector<1x1x8x128xf32> to vector<8x128xf32>
    %177 = vector.shape_cast %174 : vector<8x128xf32> to vector<1x1x8x128xf32>
    tpu.vector_store %arg9[%c0_144, %c0_145, %c0_146, %c0_147], %177 {strides = array<i32>} : memref<1x4x8x128xf32, #tpu.memory_space<vmem>>, vector<1x1x8x128xf32>,
    %c0_148 = arith.constant 0 : index
    %c1_149 = arith.constant 1 : index
    %c0_150 = arith.constant 0 : index
    %c0_151 = arith.constant 0 : index
    %178 = vector.load %arg9[%c0_148, %c1_149, %c0_150, %c0_151] : memref<1x4x8x128xf32, #tpu.memory_space<vmem>>, vector<1x1x8x128xf32>
    %179 = vector.shape_cast %178 : vector<1x1x8x128xf32> to vector<8x128xf32>
    %180 = vector.broadcast %24 : vector<1x128xf32> to vector<8x128xf32>
    %181 = arith.mulf %180, %179 : vector<8x128xf32>
    %182 = arith.index_cast %167 : i32 to index
    %c128_152 = arith.constant 128 : index
    %183 = vector.load %arg10[%182, %c128_152] : memref<64x512xf32, #tpu.memory_space<vmem>>, vector<8x128xf32>
    %184 = arith.addf %181, %183 : vector<8x128xf32>
    %c0_153 = arith.constant 0 : index
    %c1_154 = arith.constant 1 : index
    %c0_155 = arith.constant 0 : index
    %c0_156 = arith.constant 0 : index
    %185 = vector.load %arg9[%c0_153, %c1_154, %c0_155, %c0_156] : memref<1x4x8x128xf32, #tpu.memory_space<vmem>>, vector<1x1x8x128xf32>
    %186 = vector.shape_cast %185 : vector<1x1x8x128xf32> to vector<8x128xf32>
    %187 = vector.shape_cast %184 : vector<8x128xf32> to vector<1x1x8x128xf32>
    tpu.vector_store %arg9[%c0_153, %c1_154, %c0_155, %c0_156], %187 {strides = array<i32>} : memref<1x4x8x128xf32, #tpu.memory_space<vmem>>, vector<1x1x8x128xf32>,
    %188 = arith.addf %174, %184 : vector<8x128xf32>
    %c0_157 = arith.constant 0 : index
    %c2_158 = arith.constant 2 : index
    %c0_159 = arith.constant 0 : index
    %c0_160 = arith.constant 0 : index
    %189 = vector.load %arg9[%c0_157, %c2_158, %c0_159, %c0_160] : memref<1x4x8x128xf32, #tpu.memory_space<vmem>>, vector<1x1x8x128xf32>
    %190 = vector.shape_cast %189 : vector<1x1x8x128xf32> to vector<8x128xf32>
    %191 = vector.broadcast %26 : vector<1x128xf32> to vector<8x128xf32>
    %192 = arith.mulf %191, %190 : vector<8x128xf32>
    %193 = arith.index_cast %167 : i32 to index
    %c256_161 = arith.constant 256 : index
    %194 = vector.load %arg10[%193, %c256_161] : memref<64x512xf32, #tpu.memory_space<vmem>>, vector<8x128xf32>
    %195 = arith.addf %192, %194 : vector<8x128xf32>
    %c0_162 = arith.constant 0 : index
    %c2_163 = arith.constant 2 : index
    %c0_164 = arith.constant 0 : index
    %c0_165 = arith.constant 0 : index
    %196 = vector.load %arg9[%c0_162, %c2_163, %c0_164, %c0_165] : memref<1x4x8x128xf32, #tpu.memory_space<vmem>>, vector<1x1x8x128xf32>
    %197 = vector.shape_cast %196 : vector<1x1x8x128xf32> to vector<8x128xf32>
    %198 = vector.shape_cast %195 : vector<8x128xf32> to vector<1x1x8x128xf32>
    tpu.vector_store %arg9[%c0_162, %c2_163, %c0_164, %c0_165], %198 {strides = array<i32>} : memref<1x4x8x128xf32, #tpu.memory_space<vmem>>, vector<1x1x8x128xf32>,
    %199 = arith.addf %188, %195 : vector<8x128xf32>
    %c0_166 = arith.constant 0 : index
    %c3_167 = arith.constant 3 : index
    %c0_168 = arith.constant 0 : index
    %c0_169 = arith.constant 0 : index
    %200 = vector.load %arg9[%c0_166, %c3_167, %c0_168, %c0_169] : memref<1x4x8x128xf32, #tpu.memory_space<vmem>>, vector<1x1x8x128xf32>
    %201 = vector.shape_cast %200 : vector<1x1x8x128xf32> to vector<8x128xf32>
    %202 = vector.broadcast %28 : vector<1x128xf32> to vector<8x128xf32>
    %203 = arith.mulf %202, %201 : vector<8x128xf32>
    %204 = arith.index_cast %167 : i32 to index
    %c384_170 = arith.constant 384 : index
    %205 = vector.load %arg10[%204, %c384_170] : memref<64x512xf32, #tpu.memory_space<vmem>>, vector<8x128xf32>
    %206 = arith.addf %203, %205 : vector<8x128xf32>
    %c0_171 = arith.constant 0 : index
    %c3_172 = arith.constant 3 : index
    %c0_173 = arith.constant 0 : index
    %c0_174 = arith.constant 0 : index
    %207 = vector.load %arg9[%c0_171, %c3_172, %c0_173, %c0_174] : memref<1x4x8x128xf32, #tpu.memory_space<vmem>>, vector<1x1x8x128xf32>
    %208 = vector.shape_cast %207 : vector<1x1x8x128xf32> to vector<8x128xf32>
    %209 = vector.shape_cast %206 : vector<8x128xf32> to vector<1x1x8x128xf32>
    tpu.vector_store %arg9[%c0_171, %c3_172, %c0_173, %c0_174], %209 {strides = array<i32>} : memref<1x4x8x128xf32, #tpu.memory_space<vmem>>, vector<1x1x8x128xf32>,
    %210 = arith.addf %199, %206 : vector<8x128xf32>
    %c0_175 = arith.constant 0 : index
    %c0_176 = arith.constant 0 : index
    %211 = vector.load %arg11[%c0_175, %c0_176] : memref<8x128xf32, #tpu.memory_space<vmem>>, vector<8x128xf32>
    %212 = vector.broadcast %18 : vector<1x128xf32> to vector<8x128xf32>
    %213 = arith.mulf %212, %211 : vector<8x128xf32>
    %214 = vector.broadcast %20 : vector<1x128xf32> to vector<8x128xf32>
    %215 = arith.mulf %214, %210 : vector<8x128xf32>
    %216 = arith.addf %213, %215 : vector<8x128xf32>
    %c0_177 = arith.constant 0 : index
    %c0_178 = arith.constant 0 : index
    %217 = vector.load %arg12[%c0_177, %c0_178] : memref<8x128xf32, #tpu.memory_space<vmem>>, vector<8x128xf32>
    %cst_179 = arith.constant 1.000000e+00 : f32
    %218 = vector.broadcast %cst_179 : f32 to vector<8x128xf32>
    %219 = arith.mulf %218, %217 : vector<8x128xf32>
    %220 = arith.subf %216, %219 : vector<8x128xf32>
    %cst_180 = arith.constant 1.000000e+00 : f32
    %221 = vector.broadcast %cst_180 : f32 to vector<8x128xf32>
    %222 = arith.cmpf ogt, %220, %221 : vector<8x128xf32>
    %223 = arith.extui %222 : vector<8x128xi1> to vector<8x128xi32>
    %224 = arith.sitofp %223 : vector<8x128xi32> to vector<8x128xf32>
    %c0_181 = arith.constant 0 : index
    %c0_182 = arith.constant 0 : index
    %225 = vector.load %arg11[%c0_181, %c0_182] : memref<8x128xf32, #tpu.memory_space<vmem>>, vector<8x128xf32>
    tpu.vector_store %arg11[%c0_181, %c0_182], %220 {strides = array<i32>} : memref<8x128xf32, #tpu.memory_space<vmem>>, vector<8x128xf32>,
    %c0_183 = arith.constant 0 : index
    %c0_184 = arith.constant 0 : index
    %226 = vector.load %arg12[%c0_183, %c0_184] : memref<8x128xf32, #tpu.memory_space<vmem>>, vector<8x128xf32>
    tpu.vector_store %arg12[%c0_183, %c0_184], %224 {strides = array<i32>} : memref<8x128xf32, #tpu.memory_space<vmem>>, vector<8x128xf32>,
    %c0_185 = arith.constant 0 : index
    %227 = arith.index_cast %c2_i32 : i32 to index
    %c0_186 = arith.constant 0 : index
    %c0_187 = arith.constant 0 : index
    %228 = vector.load %arg7[%c0_185, %227, %c0_186, %c0_187] : memref<1x8x8x128xf32, #tpu.memory_space<vmem>>, vector<1x1x8x128xf32>
    %229 = vector.shape_cast %228 : vector<1x1x8x128xf32> to vector<8x128xf32>
    %230 = vector.shape_cast %220 : vector<8x128xf32> to vector<1x1x8x128xf32>
    tpu.vector_store %arg7[%c0_185, %227, %c0_186, %c0_187], %230 {strides = array<i32>} : memref<1x8x8x128xf32, #tpu.memory_space<vmem>>, vector<1x1x8x128xf32>,
    %231 = arith.truncf %224 : vector<8x128xf32> to vector<8x128xbf16>
    %c0_188 = arith.constant 0 : index
    %232 = arith.index_cast %c2_i32 : i32 to index
    %c0_189 = arith.constant 0 : index
    %c0_190 = arith.constant 0 : index
    %233 = vector.load %arg8[%c0_188, %232, %c0_189, %c0_190] : memref<1x8x8x128xbf16, #tpu.memory_space<vmem>>, vector<1x1x8x128xbf16>
    %234 = vector.shape_cast %233 : vector<1x1x8x128xbf16> to vector<8x128xbf16>
    %235 = vector.shape_cast %231 : vector<8x128xbf16> to vector<1x1x8x128xbf16>
    tpu.vector_store %arg8[%c0_188, %232, %c0_189, %c0_190], %235 {strides = array<i32>} : memref<1x8x8x128xbf16, #tpu.memory_space<vmem>>, vector<1x1x8x128xbf16>,
    %c3_i32 = arith.constant 3 : i32
    %c8_i32_191 = arith.constant 8 : i32
    %236 = arith.muli %c3_i32, %c8_i32_191 : i32
    %c0_192 = arith.constant 0 : index
    %c0_193 = arith.constant 0 : index
    %c0_194 = arith.constant 0 : index
    %c0_195 = arith.constant 0 : index
    %237 = vector.load %arg9[%c0_192, %c0_193, %c0_194, %c0_195] : memref<1x4x8x128xf32, #tpu.memory_space<vmem>>, vector<1x1x8x128xf32>
    %238 = vector.shape_cast %237 : vector<1x1x8x128xf32> to vector<8x128xf32>
    %239 = vector.broadcast %22 : vector<1x128xf32> to vector<8x128xf32>
    %240 = arith.mulf %239, %238 : vector<8x128xf32>
    %241 = arith.index_cast %236 : i32 to index
    %c0_196 = arith.constant 0 : index
    %242 = vector.load %arg10[%241, %c0_196] : memref<64x512xf32, #tpu.memory_space<vmem>>, vector<8x128xf32>
    %243 = arith.addf %240, %242 : vector<8x128xf32>
    %c0_197 = arith.constant 0 : index
    %c0_198 = arith.constant 0 : index
    %c0_199 = arith.constant 0 : index
    %c0_200 = arith.constant 0 : index
    %244 = vector.load %arg9[%c0_197, %c0_198, %c0_199, %c0_200] : memref<1x4x8x128xf32, #tpu.memory_space<vmem>>, vector<1x1x8x128xf32>
    %245 = vector.shape_cast %244 : vector<1x1x8x128xf32> to vector<8x128xf32>
    %246 = vector.shape_cast %243 : vector<8x128xf32> to vector<1x1x8x128xf32>
    tpu.vector_store %arg9[%c0_197, %c0_198, %c0_199, %c0_200], %246 {strides = array<i32>} : memref<1x4x8x128xf32, #tpu.memory_space<vmem>>, vector<1x1x8x128xf32>,
    %c0_201 = arith.constant 0 : index
    %c1_202 = arith.constant 1 : index
    %c0_203 = arith.constant 0 : index
    %c0_204 = arith.constant 0 : index
    %247 = vector.load %arg9[%c0_201, %c1_202, %c0_203, %c0_204] : memref<1x4x8x128xf32, #tpu.memory_space<vmem>>, vector<1x1x8x128xf32>
    %248 = vector.shape_cast %247 : vector<1x1x8x128xf32> to vector<8x128xf32>
    %249 = vector.broadcast %24 : vector<1x128xf32> to vector<8x128xf32>
    %250 = arith.mulf %249, %248 : vector<8x128xf32>
    %251 = arith.index_cast %236 : i32 to index
    %c128_205 = arith.constant 128 : index
    %252 = vector.load %arg10[%251, %c128_205] : memref<64x512xf32, #tpu.memory_space<vmem>>, vector<8x128xf32>
    %253 = arith.addf %250, %252 : vector<8x128xf32>
    %c0_206 = arith.constant 0 : index
    %c1_207 = arith.constant 1 : index
    %c0_208 = arith.constant 0 : index
    %c0_209 = arith.constant 0 : index
    %254 = vector.load %arg9[%c0_206, %c1_207, %c0_208, %c0_209] : memref<1x4x8x128xf32, #tpu.memory_space<vmem>>, vector<1x1x8x128xf32>
    %255 = vector.shape_cast %254 : vector<1x1x8x128xf32> to vector<8x128xf32>
    %256 = vector.shape_cast %253 : vector<8x128xf32> to vector<1x1x8x128xf32>
    tpu.vector_store %arg9[%c0_206, %c1_207, %c0_208, %c0_209], %256 {strides = array<i32>} : memref<1x4x8x128xf32, #tpu.memory_space<vmem>>, vector<1x1x8x128xf32>,
    %257 = arith.addf %243, %253 : vector<8x128xf32>
    %c0_210 = arith.constant 0 : index
    %c2_211 = arith.constant 2 : index
    %c0_212 = arith.constant 0 : index
    %c0_213 = arith.constant 0 : index
    %258 = vector.load %arg9[%c0_210, %c2_211, %c0_212, %c0_213] : memref<1x4x8x128xf32, #tpu.memory_space<vmem>>, vector<1x1x8x128xf32>
    %259 = vector.shape_cast %258 : vector<1x1x8x128xf32> to vector<8x128xf32>
    %260 = vector.broadcast %26 : vector<1x128xf32> to vector<8x128xf32>
    %261 = arith.mulf %260, %259 : vector<8x128xf32>
    %262 = arith.index_cast %236 : i32 to index
    %c256_214 = arith.constant 256 : index
    %263 = vector.load %arg10[%262, %c256_214] : memref<64x512xf32, #tpu.memory_space<vmem>>, vector<8x128xf32>
    %264 = arith.addf %261, %263 : vector<8x128xf32>
    %c0_215 = arith.constant 0 : index
    %c2_216 = arith.constant 2 : index
    %c0_217 = arith.constant 0 : index
    %c0_218 = arith.constant 0 : index
    %265 = vector.load %arg9[%c0_215, %c2_216, %c0_217, %c0_218] : memref<1x4x8x128xf32, #tpu.memory_space<vmem>>, vector<1x1x8x128xf32>
    %266 = vector.shape_cast %265 : vector<1x1x8x128xf32> to vector<8x128xf32>
    %267 = vector.shape_cast %264 : vector<8x128xf32> to vector<1x1x8x128xf32>
    tpu.vector_store %arg9[%c0_215, %c2_216, %c0_217, %c0_218], %267 {strides = array<i32>} : memref<1x4x8x128xf32, #tpu.memory_space<vmem>>, vector<1x1x8x128xf32>,
    %268 = arith.addf %257, %264 : vector<8x128xf32>
    %c0_219 = arith.constant 0 : index
    %c3_220 = arith.constant 3 : index
    %c0_221 = arith.constant 0 : index
    %c0_222 = arith.constant 0 : index
    %269 = vector.load %arg9[%c0_219, %c3_220, %c0_221, %c0_222] : memref<1x4x8x128xf32, #tpu.memory_space<vmem>>, vector<1x1x8x128xf32>
    %270 = vector.shape_cast %269 : vector<1x1x8x128xf32> to vector<8x128xf32>
    %271 = vector.broadcast %28 : vector<1x128xf32> to vector<8x128xf32>
    %272 = arith.mulf %271, %270 : vector<8x128xf32>
    %273 = arith.index_cast %236 : i32 to index
    %c384_223 = arith.constant 384 : index
    %274 = vector.load %arg10[%273, %c384_223] : memref<64x512xf32, #tpu.memory_space<vmem>>, vector<8x128xf32>
    %275 = arith.addf %272, %274 : vector<8x128xf32>
    %c0_224 = arith.constant 0 : index
    %c3_225 = arith.constant 3 : index
    %c0_226 = arith.constant 0 : index
    %c0_227 = arith.constant 0 : index
    %276 = vector.load %arg9[%c0_224, %c3_225, %c0_226, %c0_227] : memref<1x4x8x128xf32, #tpu.memory_space<vmem>>, vector<1x1x8x128xf32>
    %277 = vector.shape_cast %276 : vector<1x1x8x128xf32> to vector<8x128xf32>
    %278 = vector.shape_cast %275 : vector<8x128xf32> to vector<1x1x8x128xf32>
    tpu.vector_store %arg9[%c0_224, %c3_225, %c0_226, %c0_227], %278 {strides = array<i32>} : memref<1x4x8x128xf32, #tpu.memory_space<vmem>>, vector<1x1x8x128xf32>,
    %279 = arith.addf %268, %275 : vector<8x128xf32>
    %c0_228 = arith.constant 0 : index
    %c0_229 = arith.constant 0 : index
    %280 = vector.load %arg11[%c0_228, %c0_229] : memref<8x128xf32, #tpu.memory_space<vmem>>, vector<8x128xf32>
    %281 = vector.broadcast %18 : vector<1x128xf32> to vector<8x128xf32>
    %282 = arith.mulf %281, %280 : vector<8x128xf32>
    %283 = vector.broadcast %20 : vector<1x128xf32> to vector<8x128xf32>
    %284 = arith.mulf %283, %279 : vector<8x128xf32>
    %285 = arith.addf %282, %284 : vector<8x128xf32>
    %c0_230 = arith.constant 0 : index
    %c0_231 = arith.constant 0 : index
    %286 = vector.load %arg12[%c0_230, %c0_231] : memref<8x128xf32, #tpu.memory_space<vmem>>, vector<8x128xf32>
    %cst_232 = arith.constant 1.000000e+00 : f32
    %287 = vector.broadcast %cst_232 : f32 to vector<8x128xf32>
    %288 = arith.mulf %287, %286 : vector<8x128xf32>
    %289 = arith.subf %285, %288 : vector<8x128xf32>
    %cst_233 = arith.constant 1.000000e+00 : f32
    %290 = vector.broadcast %cst_233 : f32 to vector<8x128xf32>
    %291 = arith.cmpf ogt, %289, %290 : vector<8x128xf32>
    %292 = arith.extui %291 : vector<8x128xi1> to vector<8x128xi32>
    %293 = arith.sitofp %292 : vector<8x128xi32> to vector<8x128xf32>
    %c0_234 = arith.constant 0 : index
    %c0_235 = arith.constant 0 : index
    %294 = vector.load %arg11[%c0_234, %c0_235] : memref<8x128xf32, #tpu.memory_space<vmem>>, vector<8x128xf32>
    tpu.vector_store %arg11[%c0_234, %c0_235], %289 {strides = array<i32>} : memref<8x128xf32, #tpu.memory_space<vmem>>, vector<8x128xf32>,
    %c0_236 = arith.constant 0 : index
    %c0_237 = arith.constant 0 : index
    %295 = vector.load %arg12[%c0_236, %c0_237] : memref<8x128xf32, #tpu.memory_space<vmem>>, vector<8x128xf32>
    tpu.vector_store %arg12[%c0_236, %c0_237], %293 {strides = array<i32>} : memref<8x128xf32, #tpu.memory_space<vmem>>, vector<8x128xf32>,
    %c0_238 = arith.constant 0 : index
    %296 = arith.index_cast %c3_i32 : i32 to index
    %c0_239 = arith.constant 0 : index
    %c0_240 = arith.constant 0 : index
    %297 = vector.load %arg7[%c0_238, %296, %c0_239, %c0_240] : memref<1x8x8x128xf32, #tpu.memory_space<vmem>>, vector<1x1x8x128xf32>
    %298 = vector.shape_cast %297 : vector<1x1x8x128xf32> to vector<8x128xf32>
    %299 = vector.shape_cast %289 : vector<8x128xf32> to vector<1x1x8x128xf32>
    tpu.vector_store %arg7[%c0_238, %296, %c0_239, %c0_240], %299 {strides = array<i32>} : memref<1x8x8x128xf32, #tpu.memory_space<vmem>>, vector<1x1x8x128xf32>,
    %300 = arith.truncf %293 : vector<8x128xf32> to vector<8x128xbf16>
    %c0_241 = arith.constant 0 : index
    %301 = arith.index_cast %c3_i32 : i32 to index
    %c0_242 = arith.constant 0 : index
    %c0_243 = arith.constant 0 : index
    %302 = vector.load %arg8[%c0_241, %301, %c0_242, %c0_243] : memref<1x8x8x128xbf16, #tpu.memory_space<vmem>>, vector<1x1x8x128xbf16>
    %303 = vector.shape_cast %302 : vector<1x1x8x128xbf16> to vector<8x128xbf16>
    %304 = vector.shape_cast %300 : vector<8x128xbf16> to vector<1x1x8x128xbf16>
    tpu.vector_store %arg8[%c0_241, %301, %c0_242, %c0_243], %304 {strides = array<i32>} : memref<1x8x8x128xbf16, #tpu.memory_space<vmem>>, vector<1x1x8x128xbf16>,
    %c4_i32 = arith.constant 4 : i32
    %c8_i32_244 = arith.constant 8 : i32
    %305 = arith.muli %c4_i32, %c8_i32_244 : i32
    %c0_245 = arith.constant 0 : index
    %c0_246 = arith.constant 0 : index
    %c0_247 = arith.constant 0 : index
    %c0_248 = arith.constant 0 : index
    %306 = vector.load %arg9[%c0_245, %c0_246, %c0_247, %c0_248] : memref<1x4x8x128xf32, #tpu.memory_space<vmem>>, vector<1x1x8x128xf32>
    %307 = vector.shape_cast %306 : vector<1x1x8x128xf32> to vector<8x128xf32>
    %308 = vector.broadcast %22 : vector<1x128xf32> to vector<8x128xf32>
    %309 = arith.mulf %308, %307 : vector<8x128xf32>
    %310 = arith.index_cast %305 : i32 to index
    %c0_249 = arith.constant 0 : index
    %311 = vector.load %arg10[%310, %c0_249] : memref<64x512xf32, #tpu.memory_space<vmem>>, vector<8x128xf32>
    %312 = arith.addf %309, %311 : vector<8x128xf32>
    %c0_250 = arith.constant 0 : index
    %c0_251 = arith.constant 0 : index
    %c0_252 = arith.constant 0 : index
    %c0_253 = arith.constant 0 : index
    %313 = vector.load %arg9[%c0_250, %c0_251, %c0_252, %c0_253] : memref<1x4x8x128xf32, #tpu.memory_space<vmem>>, vector<1x1x8x128xf32>
    %314 = vector.shape_cast %313 : vector<1x1x8x128xf32> to vector<8x128xf32>
    %315 = vector.shape_cast %312 : vector<8x128xf32> to vector<1x1x8x128xf32>
    tpu.vector_store %arg9[%c0_250, %c0_251, %c0_252, %c0_253], %315 {strides = array<i32>} : memref<1x4x8x128xf32, #tpu.memory_space<vmem>>, vector<1x1x8x128xf32>,
    %c0_254 = arith.constant 0 : index
    %c1_255 = arith.constant 1 : index
    %c0_256 = arith.constant 0 : index
    %c0_257 = arith.constant 0 : index
    %316 = vector.load %arg9[%c0_254, %c1_255, %c0_256, %c0_257] : memref<1x4x8x128xf32, #tpu.memory_space<vmem>>, vector<1x1x8x128xf32>
    %317 = vector.shape_cast %316 : vector<1x1x8x128xf32> to vector<8x128xf32>
    %318 = vector.broadcast %24 : vector<1x128xf32> to vector<8x128xf32>
    %319 = arith.mulf %318, %317 : vector<8x128xf32>
    %320 = arith.index_cast %305 : i32 to index
    %c128_258 = arith.constant 128 : index
    %321 = vector.load %arg10[%320, %c128_258] : memref<64x512xf32, #tpu.memory_space<vmem>>, vector<8x128xf32>
    %322 = arith.addf %319, %321 : vector<8x128xf32>
    %c0_259 = arith.constant 0 : index
    %c1_260 = arith.constant 1 : index
    %c0_261 = arith.constant 0 : index
    %c0_262 = arith.constant 0 : index
    %323 = vector.load %arg9[%c0_259, %c1_260, %c0_261, %c0_262] : memref<1x4x8x128xf32, #tpu.memory_space<vmem>>, vector<1x1x8x128xf32>
    %324 = vector.shape_cast %323 : vector<1x1x8x128xf32> to vector<8x128xf32>
    %325 = vector.shape_cast %322 : vector<8x128xf32> to vector<1x1x8x128xf32>
    tpu.vector_store %arg9[%c0_259, %c1_260, %c0_261, %c0_262], %325 {strides = array<i32>} : memref<1x4x8x128xf32, #tpu.memory_space<vmem>>, vector<1x1x8x128xf32>,
    %326 = arith.addf %312, %322 : vector<8x128xf32>
    %c0_263 = arith.constant 0 : index
    %c2_264 = arith.constant 2 : index
    %c0_265 = arith.constant 0 : index
    %c0_266 = arith.constant 0 : index
    %327 = vector.load %arg9[%c0_263, %c2_264, %c0_265, %c0_266] : memref<1x4x8x128xf32, #tpu.memory_space<vmem>>, vector<1x1x8x128xf32>
    %328 = vector.shape_cast %327 : vector<1x1x8x128xf32> to vector<8x128xf32>
    %329 = vector.broadcast %26 : vector<1x128xf32> to vector<8x128xf32>
    %330 = arith.mulf %329, %328 : vector<8x128xf32>
    %331 = arith.index_cast %305 : i32 to index
    %c256_267 = arith.constant 256 : index
    %332 = vector.load %arg10[%331, %c256_267] : memref<64x512xf32, #tpu.memory_space<vmem>>, vector<8x128xf32>
    %333 = arith.addf %330, %332 : vector<8x128xf32>
    %c0_268 = arith.constant 0 : index
    %c2_269 = arith.constant 2 : index
    %c0_270 = arith.constant 0 : index
    %c0_271 = arith.constant 0 : index
    %334 = vector.load %arg9[%c0_268, %c2_269, %c0_270, %c0_271] : memref<1x4x8x128xf32, #tpu.memory_space<vmem>>, vector<1x1x8x128xf32>
    %335 = vector.shape_cast %334 : vector<1x1x8x128xf32> to vector<8x128xf32>
    %336 = vector.shape_cast %333 : vector<8x128xf32> to vector<1x1x8x128xf32>
    tpu.vector_store %arg9[%c0_268, %c2_269, %c0_270, %c0_271], %336 {strides = array<i32>} : memref<1x4x8x128xf32, #tpu.memory_space<vmem>>, vector<1x1x8x128xf32>,
    %337 = arith.addf %326, %333 : vector<8x128xf32>
    %c0_272 = arith.constant 0 : index
    %c3_273 = arith.constant 3 : index
    %c0_274 = arith.constant 0 : index
    %c0_275 = arith.constant 0 : index
    %338 = vector.load %arg9[%c0_272, %c3_273, %c0_274, %c0_275] : memref<1x4x8x128xf32, #tpu.memory_space<vmem>>, vector<1x1x8x128xf32>
    %339 = vector.shape_cast %338 : vector<1x1x8x128xf32> to vector<8x128xf32>
    %340 = vector.broadcast %28 : vector<1x128xf32> to vector<8x128xf32>
    %341 = arith.mulf %340, %339 : vector<8x128xf32>
    %342 = arith.index_cast %305 : i32 to index
    %c384_276 = arith.constant 384 : index
    %343 = vector.load %arg10[%342, %c384_276] : memref<64x512xf32, #tpu.memory_space<vmem>>, vector<8x128xf32>
    %344 = arith.addf %341, %343 : vector<8x128xf32>
    %c0_277 = arith.constant 0 : index
    %c3_278 = arith.constant 3 : index
    %c0_279 = arith.constant 0 : index
    %c0_280 = arith.constant 0 : index
    %345 = vector.load %arg9[%c0_277, %c3_278, %c0_279, %c0_280] : memref<1x4x8x128xf32, #tpu.memory_space<vmem>>, vector<1x1x8x128xf32>
    %346 = vector.shape_cast %345 : vector<1x1x8x128xf32> to vector<8x128xf32>
    %347 = vector.shape_cast %344 : vector<8x128xf32> to vector<1x1x8x128xf32>
    tpu.vector_store %arg9[%c0_277, %c3_278, %c0_279, %c0_280], %347 {strides = array<i32>} : memref<1x4x8x128xf32, #tpu.memory_space<vmem>>, vector<1x1x8x128xf32>,
    %348 = arith.addf %337, %344 : vector<8x128xf32>
    %c0_281 = arith.constant 0 : index
    %c0_282 = arith.constant 0 : index
    %349 = vector.load %arg11[%c0_281, %c0_282] : memref<8x128xf32, #tpu.memory_space<vmem>>, vector<8x128xf32>
    %350 = vector.broadcast %18 : vector<1x128xf32> to vector<8x128xf32>
    %351 = arith.mulf %350, %349 : vector<8x128xf32>
    %352 = vector.broadcast %20 : vector<1x128xf32> to vector<8x128xf32>
    %353 = arith.mulf %352, %348 : vector<8x128xf32>
    %354 = arith.addf %351, %353 : vector<8x128xf32>
    %c0_283 = arith.constant 0 : index
    %c0_284 = arith.constant 0 : index
    %355 = vector.load %arg12[%c0_283, %c0_284] : memref<8x128xf32, #tpu.memory_space<vmem>>, vector<8x128xf32>
    %cst_285 = arith.constant 1.000000e+00 : f32
    %356 = vector.broadcast %cst_285 : f32 to vector<8x128xf32>
    %357 = arith.mulf %356, %355 : vector<8x128xf32>
    %358 = arith.subf %354, %357 : vector<8x128xf32>
    %cst_286 = arith.constant 1.000000e+00 : f32
    %359 = vector.broadcast %cst_286 : f32 to vector<8x128xf32>
    %360 = arith.cmpf ogt, %358, %359 : vector<8x128xf32>
    %361 = arith.extui %360 : vector<8x128xi1> to vector<8x128xi32>
    %362 = arith.sitofp %361 : vector<8x128xi32> to vector<8x128xf32>
    %c0_287 = arith.constant 0 : index
    %c0_288 = arith.constant 0 : index
    %363 = vector.load %arg11[%c0_287, %c0_288] : memref<8x128xf32, #tpu.memory_space<vmem>>, vector<8x128xf32>
    tpu.vector_store %arg11[%c0_287, %c0_288], %358 {strides = array<i32>} : memref<8x128xf32, #tpu.memory_space<vmem>>, vector<8x128xf32>,
    %c0_289 = arith.constant 0 : index
    %c0_290 = arith.constant 0 : index
    %364 = vector.load %arg12[%c0_289, %c0_290] : memref<8x128xf32, #tpu.memory_space<vmem>>, vector<8x128xf32>
    tpu.vector_store %arg12[%c0_289, %c0_290], %362 {strides = array<i32>} : memref<8x128xf32, #tpu.memory_space<vmem>>, vector<8x128xf32>,
    %c0_291 = arith.constant 0 : index
    %365 = arith.index_cast %c4_i32 : i32 to index
    %c0_292 = arith.constant 0 : index
    %c0_293 = arith.constant 0 : index
    %366 = vector.load %arg7[%c0_291, %365, %c0_292, %c0_293] : memref<1x8x8x128xf32, #tpu.memory_space<vmem>>, vector<1x1x8x128xf32>
    %367 = vector.shape_cast %366 : vector<1x1x8x128xf32> to vector<8x128xf32>
    %368 = vector.shape_cast %358 : vector<8x128xf32> to vector<1x1x8x128xf32>
    tpu.vector_store %arg7[%c0_291, %365, %c0_292, %c0_293], %368 {strides = array<i32>} : memref<1x8x8x128xf32, #tpu.memory_space<vmem>>, vector<1x1x8x128xf32>,
    %369 = arith.truncf %362 : vector<8x128xf32> to vector<8x128xbf16>
    %c0_294 = arith.constant 0 : index
    %370 = arith.index_cast %c4_i32 : i32 to index
    %c0_295 = arith.constant 0 : index
    %c0_296 = arith.constant 0 : index
    %371 = vector.load %arg8[%c0_294, %370, %c0_295, %c0_296] : memref<1x8x8x128xbf16, #tpu.memory_space<vmem>>, vector<1x1x8x128xbf16>
    %372 = vector.shape_cast %371 : vector<1x1x8x128xbf16> to vector<8x128xbf16>
    %373 = vector.shape_cast %369 : vector<8x128xbf16> to vector<1x1x8x128xbf16>
    tpu.vector_store %arg8[%c0_294, %370, %c0_295, %c0_296], %373 {strides = array<i32>} : memref<1x8x8x128xbf16, #tpu.memory_space<vmem>>, vector<1x1x8x128xbf16>,
    %c5_i32 = arith.constant 5 : i32
    %c8_i32_297 = arith.constant 8 : i32
    %374 = arith.muli %c5_i32, %c8_i32_297 : i32
    %c0_298 = arith.constant 0 : index
    %c0_299 = arith.constant 0 : index
    %c0_300 = arith.constant 0 : index
    %c0_301 = arith.constant 0 : index
    %375 = vector.load %arg9[%c0_298, %c0_299, %c0_300, %c0_301] : memref<1x4x8x128xf32, #tpu.memory_space<vmem>>, vector<1x1x8x128xf32>
    %376 = vector.shape_cast %375 : vector<1x1x8x128xf32> to vector<8x128xf32>
    %377 = vector.broadcast %22 : vector<1x128xf32> to vector<8x128xf32>
    %378 = arith.mulf %377, %376 : vector<8x128xf32>
    %379 = arith.index_cast %374 : i32 to index
    %c0_302 = arith.constant 0 : index
    %380 = vector.load %arg10[%379, %c0_302] : memref<64x512xf32, #tpu.memory_space<vmem>>, vector<8x128xf32>
    %381 = arith.addf %378, %380 : vector<8x128xf32>
    %c0_303 = arith.constant 0 : index
    %c0_304 = arith.constant 0 : index
    %c0_305 = arith.constant 0 : index
    %c0_306 = arith.constant 0 : index
    %382 = vector.load %arg9[%c0_303, %c0_304, %c0_305, %c0_306] : memref<1x4x8x128xf32, #tpu.memory_space<vmem>>, vector<1x1x8x128xf32>
    %383 = vector.shape_cast %382 : vector<1x1x8x128xf32> to vector<8x128xf32>
    %384 = vector.shape_cast %381 : vector<8x128xf32> to vector<1x1x8x128xf32>
    tpu.vector_store %arg9[%c0_303, %c0_304, %c0_305, %c0_306], %384 {strides = array<i32>} : memref<1x4x8x128xf32, #tpu.memory_space<vmem>>, vector<1x1x8x128xf32>,
    %c0_307 = arith.constant 0 : index
    %c1_308 = arith.constant 1 : index
    %c0_309 = arith.constant 0 : index
    %c0_310 = arith.constant 0 : index
    %385 = vector.load %arg9[%c0_307, %c1_308, %c0_309, %c0_310] : memref<1x4x8x128xf32, #tpu.memory_space<vmem>>, vector<1x1x8x128xf32>
    %386 = vector.shape_cast %385 : vector<1x1x8x128xf32> to vector<8x128xf32>
    %387 = vector.broadcast %24 : vector<1x128xf32> to vector<8x128xf32>
    %388 = arith.mulf %387, %386 : vector<8x128xf32>
    %389 = arith.index_cast %374 : i32 to index
    %c128_311 = arith.constant 128 : index
    %390 = vector.load %arg10[%389, %c128_311] : memref<64x512xf32, #tpu.memory_space<vmem>>, vector<8x128xf32>
    %391 = arith.addf %388, %390 : vector<8x128xf32>
    %c0_312 = arith.constant 0 : index
    %c1_313 = arith.constant 1 : index
    %c0_314 = arith.constant 0 : index
    %c0_315 = arith.constant 0 : index
    %392 = vector.load %arg9[%c0_312, %c1_313, %c0_314, %c0_315] : memref<1x4x8x128xf32, #tpu.memory_space<vmem>>, vector<1x1x8x128xf32>
    %393 = vector.shape_cast %392 : vector<1x1x8x128xf32> to vector<8x128xf32>
    %394 = vector.shape_cast %391 : vector<8x128xf32> to vector<1x1x8x128xf32>
    tpu.vector_store %arg9[%c0_312, %c1_313, %c0_314, %c0_315], %394 {strides = array<i32>} : memref<1x4x8x128xf32, #tpu.memory_space<vmem>>, vector<1x1x8x128xf32>,
    %395 = arith.addf %381, %391 : vector<8x128xf32>
    %c0_316 = arith.constant 0 : index
    %c2_317 = arith.constant 2 : index
    %c0_318 = arith.constant 0 : index
    %c0_319 = arith.constant 0 : index
    %396 = vector.load %arg9[%c0_316, %c2_317, %c0_318, %c0_319] : memref<1x4x8x128xf32, #tpu.memory_space<vmem>>, vector<1x1x8x128xf32>
    %397 = vector.shape_cast %396 : vector<1x1x8x128xf32> to vector<8x128xf32>
    %398 = vector.broadcast %26 : vector<1x128xf32> to vector<8x128xf32>
    %399 = arith.mulf %398, %397 : vector<8x128xf32>
    %400 = arith.index_cast %374 : i32 to index
    %c256_320 = arith.constant 256 : index
    %401 = vector.load %arg10[%400, %c256_320] : memref<64x512xf32, #tpu.memory_space<vmem>>, vector<8x128xf32>
    %402 = arith.addf %399, %401 : vector<8x128xf32>
    %c0_321 = arith.constant 0 : index
    %c2_322 = arith.constant 2 : index
    %c0_323 = arith.constant 0 : index
    %c0_324 = arith.constant 0 : index
    %403 = vector.load %arg9[%c0_321, %c2_322, %c0_323, %c0_324] : memref<1x4x8x128xf32, #tpu.memory_space<vmem>>, vector<1x1x8x128xf32>
    %404 = vector.shape_cast %403 : vector<1x1x8x128xf32> to vector<8x128xf32>
    %405 = vector.shape_cast %402 : vector<8x128xf32> to vector<1x1x8x128xf32>
    tpu.vector_store %arg9[%c0_321, %c2_322, %c0_323, %c0_324], %405 {strides = array<i32>} : memref<1x4x8x128xf32, #tpu.memory_space<vmem>>, vector<1x1x8x128xf32>,
    %406 = arith.addf %395, %402 : vector<8x128xf32>
    %c0_325 = arith.constant 0 : index
    %c3_326 = arith.constant 3 : index
    %c0_327 = arith.constant 0 : index
    %c0_328 = arith.constant 0 : index
    %407 = vector.load %arg9[%c0_325, %c3_326, %c0_327, %c0_328] : memref<1x4x8x128xf32, #tpu.memory_space<vmem>>, vector<1x1x8x128xf32>
    %408 = vector.shape_cast %407 : vector<1x1x8x128xf32> to vector<8x128xf32>
    %409 = vector.broadcast %28 : vector<1x128xf32> to vector<8x128xf32>
    %410 = arith.mulf %409, %408 : vector<8x128xf32>
    %411 = arith.index_cast %374 : i32 to index
    %c384_329 = arith.constant 384 : index
    %412 = vector.load %arg10[%411, %c384_329] : memref<64x512xf32, #tpu.memory_space<vmem>>, vector<8x128xf32>
    %413 = arith.addf %410, %412 : vector<8x128xf32>
    %c0_330 = arith.constant 0 : index
    %c3_331 = arith.constant 3 : index
    %c0_332 = arith.constant 0 : index
    %c0_333 = arith.constant 0 : index
    %414 = vector.load %arg9[%c0_330, %c3_331, %c0_332, %c0_333] : memref<1x4x8x128xf32, #tpu.memory_space<vmem>>, vector<1x1x8x128xf32>
    %415 = vector.shape_cast %414 : vector<1x1x8x128xf32> to vector<8x128xf32>
    %416 = vector.shape_cast %413 : vector<8x128xf32> to vector<1x1x8x128xf32>
    tpu.vector_store %arg9[%c0_330, %c3_331, %c0_332, %c0_333], %416 {strides = array<i32>} : memref<1x4x8x128xf32, #tpu.memory_space<vmem>>, vector<1x1x8x128xf32>,
    %417 = arith.addf %406, %413 : vector<8x128xf32>
    %c0_334 = arith.constant 0 : index
    %c0_335 = arith.constant 0 : index
    %418 = vector.load %arg11[%c0_334, %c0_335] : memref<8x128xf32, #tpu.memory_space<vmem>>, vector<8x128xf32>
    %419 = vector.broadcast %18 : vector<1x128xf32> to vector<8x128xf32>
    %420 = arith.mulf %419, %418 : vector<8x128xf32>
    %421 = vector.broadcast %20 : vector<1x128xf32> to vector<8x128xf32>
    %422 = arith.mulf %421, %417 : vector<8x128xf32>
    %423 = arith.addf %420, %422 : vector<8x128xf32>
    %c0_336 = arith.constant 0 : index
    %c0_337 = arith.constant 0 : index
    %424 = vector.load %arg12[%c0_336, %c0_337] : memref<8x128xf32, #tpu.memory_space<vmem>>, vector<8x128xf32>
    %cst_338 = arith.constant 1.000000e+00 : f32
    %425 = vector.broadcast %cst_338 : f32 to vector<8x128xf32>
    %426 = arith.mulf %425, %424 : vector<8x128xf32>
    %427 = arith.subf %423, %426 : vector<8x128xf32>
    %cst_339 = arith.constant 1.000000e+00 : f32
    %428 = vector.broadcast %cst_339 : f32 to vector<8x128xf32>
    %429 = arith.cmpf ogt, %427, %428 : vector<8x128xf32>
    %430 = arith.extui %429 : vector<8x128xi1> to vector<8x128xi32>
    %431 = arith.sitofp %430 : vector<8x128xi32> to vector<8x128xf32>
    %c0_340 = arith.constant 0 : index
    %c0_341 = arith.constant 0 : index
    %432 = vector.load %arg11[%c0_340, %c0_341] : memref<8x128xf32, #tpu.memory_space<vmem>>, vector<8x128xf32>
    tpu.vector_store %arg11[%c0_340, %c0_341], %427 {strides = array<i32>} : memref<8x128xf32, #tpu.memory_space<vmem>>, vector<8x128xf32>,
    %c0_342 = arith.constant 0 : index
    %c0_343 = arith.constant 0 : index
    %433 = vector.load %arg12[%c0_342, %c0_343] : memref<8x128xf32, #tpu.memory_space<vmem>>, vector<8x128xf32>
    tpu.vector_store %arg12[%c0_342, %c0_343], %431 {strides = array<i32>} : memref<8x128xf32, #tpu.memory_space<vmem>>, vector<8x128xf32>,
    %c0_344 = arith.constant 0 : index
    %434 = arith.index_cast %c5_i32 : i32 to index
    %c0_345 = arith.constant 0 : index
    %c0_346 = arith.constant 0 : index
    %435 = vector.load %arg7[%c0_344, %434, %c0_345, %c0_346] : memref<1x8x8x128xf32, #tpu.memory_space<vmem>>, vector<1x1x8x128xf32>
    %436 = vector.shape_cast %435 : vector<1x1x8x128xf32> to vector<8x128xf32>
    %437 = vector.shape_cast %427 : vector<8x128xf32> to vector<1x1x8x128xf32>
    tpu.vector_store %arg7[%c0_344, %434, %c0_345, %c0_346], %437 {strides = array<i32>} : memref<1x8x8x128xf32, #tpu.memory_space<vmem>>, vector<1x1x8x128xf32>,
    %438 = arith.truncf %431 : vector<8x128xf32> to vector<8x128xbf16>
    %c0_347 = arith.constant 0 : index
    %439 = arith.index_cast %c5_i32 : i32 to index
    %c0_348 = arith.constant 0 : index
    %c0_349 = arith.constant 0 : index
    %440 = vector.load %arg8[%c0_347, %439, %c0_348, %c0_349] : memref<1x8x8x128xbf16, #tpu.memory_space<vmem>>, vector<1x1x8x128xbf16>
    %441 = vector.shape_cast %440 : vector<1x1x8x128xbf16> to vector<8x128xbf16>
    %442 = vector.shape_cast %438 : vector<8x128xbf16> to vector<1x1x8x128xbf16>
    tpu.vector_store %arg8[%c0_347, %439, %c0_348, %c0_349], %442 {strides = array<i32>} : memref<1x8x8x128xbf16, #tpu.memory_space<vmem>>, vector<1x1x8x128xbf16>,
    %c6_i32 = arith.constant 6 : i32
    %c8_i32_350 = arith.constant 8 : i32
    %443 = arith.muli %c6_i32, %c8_i32_350 : i32
    %c0_351 = arith.constant 0 : index
    %c0_352 = arith.constant 0 : index
    %c0_353 = arith.constant 0 : index
    %c0_354 = arith.constant 0 : index
    %444 = vector.load %arg9[%c0_351, %c0_352, %c0_353, %c0_354] : memref<1x4x8x128xf32, #tpu.memory_space<vmem>>, vector<1x1x8x128xf32>
    %445 = vector.shape_cast %444 : vector<1x1x8x128xf32> to vector<8x128xf32>
    %446 = vector.broadcast %22 : vector<1x128xf32> to vector<8x128xf32>
    %447 = arith.mulf %446, %445 : vector<8x128xf32>
    %448 = arith.index_cast %443 : i32 to index
    %c0_355 = arith.constant 0 : index
    %449 = vector.load %arg10[%448, %c0_355] : memref<64x512xf32, #tpu.memory_space<vmem>>, vector<8x128xf32>
    %450 = arith.addf %447, %449 : vector<8x128xf32>
    %c0_356 = arith.constant 0 : index
    %c0_357 = arith.constant 0 : index
    %c0_358 = arith.constant 0 : index
    %c0_359 = arith.constant 0 : index
    %451 = vector.load %arg9[%c0_356, %c0_357, %c0_358, %c0_359] : memref<1x4x8x128xf32, #tpu.memory_space<vmem>>, vector<1x1x8x128xf32>
    %452 = vector.shape_cast %451 : vector<1x1x8x128xf32> to vector<8x128xf32>
    %453 = vector.shape_cast %450 : vector<8x128xf32> to vector<1x1x8x128xf32>
    tpu.vector_store %arg9[%c0_356, %c0_357, %c0_358, %c0_359], %453 {strides = array<i32>} : memref<1x4x8x128xf32, #tpu.memory_space<vmem>>, vector<1x1x8x128xf32>,
    %c0_360 = arith.constant 0 : index
    %c1_361 = arith.constant 1 : index
    %c0_362 = arith.constant 0 : index
    %c0_363 = arith.constant 0 : index
    %454 = vector.load %arg9[%c0_360, %c1_361, %c0_362, %c0_363] : memref<1x4x8x128xf32, #tpu.memory_space<vmem>>, vector<1x1x8x128xf32>
    %455 = vector.shape_cast %454 : vector<1x1x8x128xf32> to vector<8x128xf32>
    %456 = vector.broadcast %24 : vector<1x128xf32> to vector<8x128xf32>
    %457 = arith.mulf %456, %455 : vector<8x128xf32>
    %458 = arith.index_cast %443 : i32 to index
    %c128_364 = arith.constant 128 : index
    %459 = vector.load %arg10[%458, %c128_364] : memref<64x512xf32, #tpu.memory_space<vmem>>, vector<8x128xf32>
    %460 = arith.addf %457, %459 : vector<8x128xf32>
    %c0_365 = arith.constant 0 : index
    %c1_366 = arith.constant 1 : index
    %c0_367 = arith.constant 0 : index
    %c0_368 = arith.constant 0 : index
    %461 = vector.load %arg9[%c0_365, %c1_366, %c0_367, %c0_368] : memref<1x4x8x128xf32, #tpu.memory_space<vmem>>, vector<1x1x8x128xf32>
    %462 = vector.shape_cast %461 : vector<1x1x8x128xf32> to vector<8x128xf32>
    %463 = vector.shape_cast %460 : vector<8x128xf32> to vector<1x1x8x128xf32>
    tpu.vector_store %arg9[%c0_365, %c1_366, %c0_367, %c0_368], %463 {strides = array<i32>} : memref<1x4x8x128xf32, #tpu.memory_space<vmem>>, vector<1x1x8x128xf32>,
    %464 = arith.addf %450, %460 : vector<8x128xf32>
    %c0_369 = arith.constant 0 : index
    %c2_370 = arith.constant 2 : index
    %c0_371 = arith.constant 0 : index
    %c0_372 = arith.constant 0 : index
    %465 = vector.load %arg9[%c0_369, %c2_370, %c0_371, %c0_372] : memref<1x4x8x128xf32, #tpu.memory_space<vmem>>, vector<1x1x8x128xf32>
    %466 = vector.shape_cast %465 : vector<1x1x8x128xf32> to vector<8x128xf32>
    %467 = vector.broadcast %26 : vector<1x128xf32> to vector<8x128xf32>
    %468 = arith.mulf %467, %466 : vector<8x128xf32>
    %469 = arith.index_cast %443 : i32 to index
    %c256_373 = arith.constant 256 : index
    %470 = vector.load %arg10[%469, %c256_373] : memref<64x512xf32, #tpu.memory_space<vmem>>, vector<8x128xf32>
    %471 = arith.addf %468, %470 : vector<8x128xf32>
    %c0_374 = arith.constant 0 : index
    %c2_375 = arith.constant 2 : index
    %c0_376 = arith.constant 0 : index
    %c0_377 = arith.constant 0 : index
    %472 = vector.load %arg9[%c0_374, %c2_375, %c0_376, %c0_377] : memref<1x4x8x128xf32, #tpu.memory_space<vmem>>, vector<1x1x8x128xf32>
    %473 = vector.shape_cast %472 : vector<1x1x8x128xf32> to vector<8x128xf32>
    %474 = vector.shape_cast %471 : vector<8x128xf32> to vector<1x1x8x128xf32>
    tpu.vector_store %arg9[%c0_374, %c2_375, %c0_376, %c0_377], %474 {strides = array<i32>} : memref<1x4x8x128xf32, #tpu.memory_space<vmem>>, vector<1x1x8x128xf32>,
    %475 = arith.addf %464, %471 : vector<8x128xf32>
    %c0_378 = arith.constant 0 : index
    %c3_379 = arith.constant 3 : index
    %c0_380 = arith.constant 0 : index
    %c0_381 = arith.constant 0 : index
    %476 = vector.load %arg9[%c0_378, %c3_379, %c0_380, %c0_381] : memref<1x4x8x128xf32, #tpu.memory_space<vmem>>, vector<1x1x8x128xf32>
    %477 = vector.shape_cast %476 : vector<1x1x8x128xf32> to vector<8x128xf32>
    %478 = vector.broadcast %28 : vector<1x128xf32> to vector<8x128xf32>
    %479 = arith.mulf %478, %477 : vector<8x128xf32>
    %480 = arith.index_cast %443 : i32 to index
    %c384_382 = arith.constant 384 : index
    %481 = vector.load %arg10[%480, %c384_382] : memref<64x512xf32, #tpu.memory_space<vmem>>, vector<8x128xf32>
    %482 = arith.addf %479, %481 : vector<8x128xf32>
    %c0_383 = arith.constant 0 : index
    %c3_384 = arith.constant 3 : index
    %c0_385 = arith.constant 0 : index
    %c0_386 = arith.constant 0 : index
    %483 = vector.load %arg9[%c0_383, %c3_384, %c0_385, %c0_386] : memref<1x4x8x128xf32, #tpu.memory_space<vmem>>, vector<1x1x8x128xf32>
    %484 = vector.shape_cast %483 : vector<1x1x8x128xf32> to vector<8x128xf32>
    %485 = vector.shape_cast %482 : vector<8x128xf32> to vector<1x1x8x128xf32>
    tpu.vector_store %arg9[%c0_383, %c3_384, %c0_385, %c0_386], %485 {strides = array<i32>} : memref<1x4x8x128xf32, #tpu.memory_space<vmem>>, vector<1x1x8x128xf32>,
    %486 = arith.addf %475, %482 : vector<8x128xf32>
    %c0_387 = arith.constant 0 : index
    %c0_388 = arith.constant 0 : index
    %487 = vector.load %arg11[%c0_387, %c0_388] : memref<8x128xf32, #tpu.memory_space<vmem>>, vector<8x128xf32>
    %488 = vector.broadcast %18 : vector<1x128xf32> to vector<8x128xf32>
    %489 = arith.mulf %488, %487 : vector<8x128xf32>
    %490 = vector.broadcast %20 : vector<1x128xf32> to vector<8x128xf32>
    %491 = arith.mulf %490, %486 : vector<8x128xf32>
    %492 = arith.addf %489, %491 : vector<8x128xf32>
    %c0_389 = arith.constant 0 : index
    %c0_390 = arith.constant 0 : index
    %493 = vector.load %arg12[%c0_389, %c0_390] : memref<8x128xf32, #tpu.memory_space<vmem>>, vector<8x128xf32>
    %cst_391 = arith.constant 1.000000e+00 : f32
    %494 = vector.broadcast %cst_391 : f32 to vector<8x128xf32>
    %495 = arith.mulf %494, %493 : vector<8x128xf32>
    %496 = arith.subf %492, %495 : vector<8x128xf32>
    %cst_392 = arith.constant 1.000000e+00 : f32
    %497 = vector.broadcast %cst_392 : f32 to vector<8x128xf32>
    %498 = arith.cmpf ogt, %496, %497 : vector<8x128xf32>
    %499 = arith.extui %498 : vector<8x128xi1> to vector<8x128xi32>
    %500 = arith.sitofp %499 : vector<8x128xi32> to vector<8x128xf32>
    %c0_393 = arith.constant 0 : index
    %c0_394 = arith.constant 0 : index
    %501 = vector.load %arg11[%c0_393, %c0_394] : memref<8x128xf32, #tpu.memory_space<vmem>>, vector<8x128xf32>
    tpu.vector_store %arg11[%c0_393, %c0_394], %496 {strides = array<i32>} : memref<8x128xf32, #tpu.memory_space<vmem>>, vector<8x128xf32>,
    %c0_395 = arith.constant 0 : index
    %c0_396 = arith.constant 0 : index
    %502 = vector.load %arg12[%c0_395, %c0_396] : memref<8x128xf32, #tpu.memory_space<vmem>>, vector<8x128xf32>
    tpu.vector_store %arg12[%c0_395, %c0_396], %500 {strides = array<i32>} : memref<8x128xf32, #tpu.memory_space<vmem>>, vector<8x128xf32>,
    %c0_397 = arith.constant 0 : index
    %503 = arith.index_cast %c6_i32 : i32 to index
    %c0_398 = arith.constant 0 : index
    %c0_399 = arith.constant 0 : index
    %504 = vector.load %arg7[%c0_397, %503, %c0_398, %c0_399] : memref<1x8x8x128xf32, #tpu.memory_space<vmem>>, vector<1x1x8x128xf32>
    %505 = vector.shape_cast %504 : vector<1x1x8x128xf32> to vector<8x128xf32>
    %506 = vector.shape_cast %496 : vector<8x128xf32> to vector<1x1x8x128xf32>
    tpu.vector_store %arg7[%c0_397, %503, %c0_398, %c0_399], %506 {strides = array<i32>} : memref<1x8x8x128xf32, #tpu.memory_space<vmem>>, vector<1x1x8x128xf32>,
    %507 = arith.truncf %500 : vector<8x128xf32> to vector<8x128xbf16>
    %c0_400 = arith.constant 0 : index
    %508 = arith.index_cast %c6_i32 : i32 to index
    %c0_401 = arith.constant 0 : index
    %c0_402 = arith.constant 0 : index
    %509 = vector.load %arg8[%c0_400, %508, %c0_401, %c0_402] : memref<1x8x8x128xbf16, #tpu.memory_space<vmem>>, vector<1x1x8x128xbf16>
    %510 = vector.shape_cast %509 : vector<1x1x8x128xbf16> to vector<8x128xbf16>
    %511 = vector.shape_cast %507 : vector<8x128xbf16> to vector<1x1x8x128xbf16>
    tpu.vector_store %arg8[%c0_400, %508, %c0_401, %c0_402], %511 {strides = array<i32>} : memref<1x8x8x128xbf16, #tpu.memory_space<vmem>>, vector<1x1x8x128xbf16>,
    %c7_i32 = arith.constant 7 : i32
    %c8_i32_403 = arith.constant 8 : i32
    %512 = arith.muli %c7_i32, %c8_i32_403 : i32
    %c0_404 = arith.constant 0 : index
    %c0_405 = arith.constant 0 : index
    %c0_406 = arith.constant 0 : index
    %c0_407 = arith.constant 0 : index
    %513 = vector.load %arg9[%c0_404, %c0_405, %c0_406, %c0_407] : memref<1x4x8x128xf32, #tpu.memory_space<vmem>>, vector<1x1x8x128xf32>
    %514 = vector.shape_cast %513 : vector<1x1x8x128xf32> to vector<8x128xf32>
    %515 = vector.broadcast %22 : vector<1x128xf32> to vector<8x128xf32>
    %516 = arith.mulf %515, %514 : vector<8x128xf32>
    %517 = arith.index_cast %512 : i32 to index
    %c0_408 = arith.constant 0 : index
    %518 = vector.load %arg10[%517, %c0_408] : memref<64x512xf32, #tpu.memory_space<vmem>>, vector<8x128xf32>
    %519 = arith.addf %516, %518 : vector<8x128xf32>
    %c0_409 = arith.constant 0 : index
    %c0_410 = arith.constant 0 : index
    %c0_411 = arith.constant 0 : index
    %c0_412 = arith.constant 0 : index
    %520 = vector.load %arg9[%c0_409, %c0_410, %c0_411, %c0_412] : memref<1x4x8x128xf32, #tpu.memory_space<vmem>>, vector<1x1x8x128xf32>
    %521 = vector.shape_cast %520 : vector<1x1x8x128xf32> to vector<8x128xf32>
    %522 = vector.shape_cast %519 : vector<8x128xf32> to vector<1x1x8x128xf32>
    tpu.vector_store %arg9[%c0_409, %c0_410, %c0_411, %c0_412], %522 {strides = array<i32>} : memref<1x4x8x128xf32, #tpu.memory_space<vmem>>, vector<1x1x8x128xf32>,
    %c0_413 = arith.constant 0 : index
    %c1_414 = arith.constant 1 : index
    %c0_415 = arith.constant 0 : index
    %c0_416 = arith.constant 0 : index
    %523 = vector.load %arg9[%c0_413, %c1_414, %c0_415, %c0_416] : memref<1x4x8x128xf32, #tpu.memory_space<vmem>>, vector<1x1x8x128xf32>
    %524 = vector.shape_cast %523 : vector<1x1x8x128xf32> to vector<8x128xf32>
    %525 = vector.broadcast %24 : vector<1x128xf32> to vector<8x128xf32>
    %526 = arith.mulf %525, %524 : vector<8x128xf32>
    %527 = arith.index_cast %512 : i32 to index
    %c128_417 = arith.constant 128 : index
    %528 = vector.load %arg10[%527, %c128_417] : memref<64x512xf32, #tpu.memory_space<vmem>>, vector<8x128xf32>
    %529 = arith.addf %526, %528 : vector<8x128xf32>
    %c0_418 = arith.constant 0 : index
    %c1_419 = arith.constant 1 : index
    %c0_420 = arith.constant 0 : index
    %c0_421 = arith.constant 0 : index
    %530 = vector.load %arg9[%c0_418, %c1_419, %c0_420, %c0_421] : memref<1x4x8x128xf32, #tpu.memory_space<vmem>>, vector<1x1x8x128xf32>
    %531 = vector.shape_cast %530 : vector<1x1x8x128xf32> to vector<8x128xf32>
    %532 = vector.shape_cast %529 : vector<8x128xf32> to vector<1x1x8x128xf32>
    tpu.vector_store %arg9[%c0_418, %c1_419, %c0_420, %c0_421], %532 {strides = array<i32>} : memref<1x4x8x128xf32, #tpu.memory_space<vmem>>, vector<1x1x8x128xf32>,
    %533 = arith.addf %519, %529 : vector<8x128xf32>
    %c0_422 = arith.constant 0 : index
    %c2_423 = arith.constant 2 : index
    %c0_424 = arith.constant 0 : index
    %c0_425 = arith.constant 0 : index
    %534 = vector.load %arg9[%c0_422, %c2_423, %c0_424, %c0_425] : memref<1x4x8x128xf32, #tpu.memory_space<vmem>>, vector<1x1x8x128xf32>
    %535 = vector.shape_cast %534 : vector<1x1x8x128xf32> to vector<8x128xf32>
    %536 = vector.broadcast %26 : vector<1x128xf32> to vector<8x128xf32>
    %537 = arith.mulf %536, %535 : vector<8x128xf32>
    %538 = arith.index_cast %512 : i32 to index
    %c256_426 = arith.constant 256 : index
    %539 = vector.load %arg10[%538, %c256_426] : memref<64x512xf32, #tpu.memory_space<vmem>>, vector<8x128xf32>
    %540 = arith.addf %537, %539 : vector<8x128xf32>
    %c0_427 = arith.constant 0 : index
    %c2_428 = arith.constant 2 : index
    %c0_429 = arith.constant 0 : index
    %c0_430 = arith.constant 0 : index
    %541 = vector.load %arg9[%c0_427, %c2_428, %c0_429, %c0_430] : memref<1x4x8x128xf32, #tpu.memory_space<vmem>>, vector<1x1x8x128xf32>
    %542 = vector.shape_cast %541 : vector<1x1x8x128xf32> to vector<8x128xf32>
    %543 = vector.shape_cast %540 : vector<8x128xf32> to vector<1x1x8x128xf32>
    tpu.vector_store %arg9[%c0_427, %c2_428, %c0_429, %c0_430], %543 {strides = array<i32>} : memref<1x4x8x128xf32, #tpu.memory_space<vmem>>, vector<1x1x8x128xf32>,
    %544 = arith.addf %533, %540 : vector<8x128xf32>
    %c0_431 = arith.constant 0 : index
    %c3_432 = arith.constant 3 : index
    %c0_433 = arith.constant 0 : index
    %c0_434 = arith.constant 0 : index
    %545 = vector.load %arg9[%c0_431, %c3_432, %c0_433, %c0_434] : memref<1x4x8x128xf32, #tpu.memory_space<vmem>>, vector<1x1x8x128xf32>
    %546 = vector.shape_cast %545 : vector<1x1x8x128xf32> to vector<8x128xf32>
    %547 = vector.broadcast %28 : vector<1x128xf32> to vector<8x128xf32>
    %548 = arith.mulf %547, %546 : vector<8x128xf32>
    %549 = arith.index_cast %512 : i32 to index
    %c384_435 = arith.constant 384 : index
    %550 = vector.load %arg10[%549, %c384_435] : memref<64x512xf32, #tpu.memory_space<vmem>>, vector<8x128xf32>
    %551 = arith.addf %548, %550 : vector<8x128xf32>
    %c0_436 = arith.constant 0 : index
    %c3_437 = arith.constant 3 : index
    %c0_438 = arith.constant 0 : index
    %c0_439 = arith.constant 0 : index
    %552 = vector.load %arg9[%c0_436, %c3_437, %c0_438, %c0_439] : memref<1x4x8x128xf32, #tpu.memory_space<vmem>>, vector<1x1x8x128xf32>
    %553 = vector.shape_cast %552 : vector<1x1x8x128xf32> to vector<8x128xf32>
    %554 = vector.shape_cast %551 : vector<8x128xf32> to vector<1x1x8x128xf32>
    tpu.vector_store %arg9[%c0_436, %c3_437, %c0_438, %c0_439], %554 {strides = array<i32>} : memref<1x4x8x128xf32, #tpu.memory_space<vmem>>, vector<1x1x8x128xf32>,
    %555 = arith.addf %544, %551 : vector<8x128xf32>
    %c0_440 = arith.constant 0 : index
    %c0_441 = arith.constant 0 : index
    %556 = vector.load %arg11[%c0_440, %c0_441] : memref<8x128xf32, #tpu.memory_space<vmem>>, vector<8x128xf32>
    %557 = vector.broadcast %18 : vector<1x128xf32> to vector<8x128xf32>
    %558 = arith.mulf %557, %556 : vector<8x128xf32>
    %559 = vector.broadcast %20 : vector<1x128xf32> to vector<8x128xf32>
    %560 = arith.mulf %559, %555 : vector<8x128xf32>
    %561 = arith.addf %558, %560 : vector<8x128xf32>
    %c0_442 = arith.constant 0 : index
    %c0_443 = arith.constant 0 : index
    %562 = vector.load %arg12[%c0_442, %c0_443] : memref<8x128xf32, #tpu.memory_space<vmem>>, vector<8x128xf32>
    %cst_444 = arith.constant 1.000000e+00 : f32
    %563 = vector.broadcast %cst_444 : f32 to vector<8x128xf32>
    %564 = arith.mulf %563, %562 : vector<8x128xf32>
    %565 = arith.subf %561, %564 : vector<8x128xf32>
    %cst_445 = arith.constant 1.000000e+00 : f32
    %566 = vector.broadcast %cst_445 : f32 to vector<8x128xf32>
    %567 = arith.cmpf ogt, %565, %566 : vector<8x128xf32>
    %568 = arith.extui %567 : vector<8x128xi1> to vector<8x128xi32>
    %569 = arith.sitofp %568 : vector<8x128xi32> to vector<8x128xf32>
    %c0_446 = arith.constant 0 : index
    %c0_447 = arith.constant 0 : index
    %570 = vector.load %arg11[%c0_446, %c0_447] : memref<8x128xf32, #tpu.memory_space<vmem>>, vector<8x128xf32>
    tpu.vector_store %arg11[%c0_446, %c0_447], %565 {strides = array<i32>} : memref<8x128xf32, #tpu.memory_space<vmem>>, vector<8x128xf32>,
    %c0_448 = arith.constant 0 : index
    %c0_449 = arith.constant 0 : index
    %571 = vector.load %arg12[%c0_448, %c0_449] : memref<8x128xf32, #tpu.memory_space<vmem>>, vector<8x128xf32>
    tpu.vector_store %arg12[%c0_448, %c0_449], %569 {strides = array<i32>} : memref<8x128xf32, #tpu.memory_space<vmem>>, vector<8x128xf32>,
    %c0_450 = arith.constant 0 : index
    %572 = arith.index_cast %c7_i32 : i32 to index
    %c0_451 = arith.constant 0 : index
    %c0_452 = arith.constant 0 : index
    %573 = vector.load %arg7[%c0_450, %572, %c0_451, %c0_452] : memref<1x8x8x128xf32, #tpu.memory_space<vmem>>, vector<1x1x8x128xf32>
    %574 = vector.shape_cast %573 : vector<1x1x8x128xf32> to vector<8x128xf32>
    %575 = vector.shape_cast %565 : vector<8x128xf32> to vector<1x1x8x128xf32>
    tpu.vector_store %arg7[%c0_450, %572, %c0_451, %c0_452], %575 {strides = array<i32>} : memref<1x8x8x128xf32, #tpu.memory_space<vmem>>, vector<1x1x8x128xf32>,
    %576 = arith.truncf %569 : vector<8x128xf32> to vector<8x128xbf16>
    %c0_453 = arith.constant 0 : index
    %577 = arith.index_cast %c7_i32 : i32 to index
    %c0_454 = arith.constant 0 : index
    %c0_455 = arith.constant 0 : index
    %578 = vector.load %arg8[%c0_453, %577, %c0_454, %c0_455] : memref<1x8x8x128xbf16, #tpu.memory_space<vmem>>, vector<1x1x8x128xbf16>
    %579 = vector.shape_cast %578 : vector<1x1x8x128xbf16> to vector<8x128xbf16>
    %580 = vector.shape_cast %576 : vector<8x128xbf16> to vector<1x1x8x128xbf16>
    tpu.vector_store %arg8[%c0_453, %577, %c0_454, %c0_455], %580 {strides = array<i32>} : memref<1x8x8x128xbf16, #tpu.memory_space<vmem>>, vector<1x1x8x128xbf16>,
    %c8_i32_456 = arith.constant 8 : i32
    return
  }
  func.func @transform_0(%arg0: i32, %arg1: i32) -> (i32, i32, i32) {
    %c0_i32 = arith.constant 0 : i32
    %c0_i32_0 = arith.constant 0 : i32
    %c0_i32_1 = arith.constant 0 : i32
    return %arg1, %c0_i32, %c0_i32_0 : i32, i32, i32
  }
  func.func @transform_1(%arg0: i32, %arg1: i32) -> (i32, i32, i32) {
    %c0_i32 = arith.constant 0 : i32
    %c0_i32_0 = arith.constant 0 : i32
    %c0_i32_1 = arith.constant 0 : i32
    return %arg0, %c0_i32, %c0_i32_0 : i32, i32, i32
  }
  func.func @transform_2(%arg0: i32, %arg1: i32) -> (i32, i32, i32, i32) {
    %c0_i32 = arith.constant 0 : i32
    %c0_i32_0 = arith.constant 0 : i32
    %c0_i32_1 = arith.constant 0 : i32
    %c0_i32_2 = arith.constant 0 : i32
    return %arg0, %c0_i32, %c0_i32_0, %c0_i32_1 : i32, i32, i32, i32
  }
  func.func @transform_3(%arg0: i32, %arg1: i32) -> (i32, i32, i32, i32) {
    %c0_i32 = arith.constant 0 : i32
    %c0_i32_0 = arith.constant 0 : i32
    %c0_i32_1 = arith.constant 0 : i32
    %c0_i32_2 = arith.constant 0 : i32
    return %arg0, %c0_i32, %c0_i32_0, %c0_i32_1 : i32, i32, i32, i32
  }
  func.func @transform_4(%arg0: i32, %arg1: i32) -> (i32, i32, i32, i32) {
    %c0_i32 = arith.constant 0 : i32
    %c0_i32_0 = arith.constant 0 : i32
    %c0_i32_1 = arith.constant 0 : i32
    %c0_i32_2 = arith.constant 0 : i32
    return %arg0, %c0_i32, %c0_i32_0, %c0_i32_1 : i32, i32, i32, i32
  }
  func.func @transform_5(%arg0: i32, %arg1: i32) -> (i32, i32, i32, i32) {
    %c0_i32 = arith.constant 0 : i32
    %c0_i32_0 = arith.constant 0 : i32
    %c0_i32_1 = arith.constant 0 : i32
    return %arg0, %arg1, %c0_i32, %c0_i32_0 : i32, i32, i32, i32
  }
  func.func @transform_6(%arg0: i32, %arg1: i32) -> (i32, i32, i32, i32) {
    %c0_i32 = arith.constant 0 : i32
    %c0_i32_0 = arith.constant 0 : i32
    %c0_i32_1 = arith.constant 0 : i32
    return %arg0, %arg1, %c0_i32, %c0_i32_0 : i32, i32, i32, i32
  }
  func.func @transform_7(%arg0: i32, %arg1: i32) -> (i32, i32, i32, i32) {
    %c0_i32 = arith.constant 0 : i32
    %c0_i32_0 = arith.constant 0 : i32
    %c0_i32_1 = arith.constant 0 : i32
    %c0_i32_2 = arith.constant 0 : i32
    return %arg0, %c0_i32, %c0_i32_0, %c0_i32_1 : i32, i32, i32, i32
  }
}

</mosaic_0001>

<bundles_post_ra>
// kernel: tpu_custom_call.1
= control target key start
LH: loop header
LB: loop body
LE: loop exit
PB: predicated region body
PF: predicated region fallthrough
CT: control target
= control target key end

     0   :  { %13 = vsyncpa [#allocation6], 0  ;;  %s1324_s0 = inlined_call_operand.vmem [shape: bf16[1,64,32], index: 0, kind: input, shape index: {}]   ;;  %s1325_s1 = inlined_call_operand.hbm [shape: bf16[1,32,512], index: 1, kind: input, shape index: {}]   ;;  %s1326_s2 = inlined_call_operand.vmem [shape: f32[1,2,1,512], index: 2, kind: input, shape index: {}]   ;;  %s1327_s3 = inlined_call_operand.vmem [shape: f32[1,6,1,128], index: 3, kind: input, shape index: {}]   ;;  %s1328_s4 = inlined_call_operand.vmem [shape: f32[1,6,8,128], index: 4, kind: input, shape index: {}]   ;;  %s1329_s5 = inlined_call_operand.hbm [shape: f32[1,8,8,128], index: 5, kind: output, shape index: {0}]   ;;  %s1330_s6 = inlined_call_operand.hbm [shape: bf16[1,8,8,128], index: 6, kind: output, shape index: {1}]   ;;  %s1331_s7 = inlined_call_operand.hbm [shape: f32[1,4,8,128], index: 7, kind: output, shape index: {2}]  }
   0x1   :  { %14 = vsyncpa [#allocation7], 0 }
   0x2   :  { %15 = vsyncpa [#allocation10], 0  ;;  %s983_s24 = smov [#allocation5]   ;;  %s889_s28 = scalar_lea.hbm %s1325_s1, 1024 }
   0x3   :  { %s23_s25 = sshll.u32 %s983_s24, 4  ;;  %p890_p0 = scmp.ne.s32.totalorder %s1325_s1, %s889_s28  ;;  %s24_s25 = int_to_ptr.vmem [resolvable:$true] %s23_s25 }
   0x4   :  { %p893_p1 = scmp.lt.u32.totalorder %s889_s28, %s1325_s1 }
   0x6   :  { %p895_p2 = pnand %p893_p1, %p890_p0 }
   0x8   :  { %898 = shalt.err (!%p895_p2)
}
   0x9   :  { %s899_s10 = scalar_lea.vmem %s24_s25, 1024  ;;  %p904_p4 = scmp.lt.s32.totalorder %s24_s25, %s24_s25 }
   0xa   :  { %p900_p3 = scmp.ne.s32.totalorder %s24_s25, %s899_s10  ;;  %p905_p5 = scmp.lt.s32.totalorder %s899_s10, %s899_s10 }
   0xc   :  { %p906_p6 = por %p905_p5, %p904_p4 }
   0xe   :  { %p907_p7 = pnand %p906_p6, %p900_p3 }
  0x10   :  { %910 = shalt.err (!%p907_p7)
}
  0x11   :  { %s984_s11 = smov 256   ;;  %s985_s12 = smov 16  }
  0x12   :  { %29 = dma.hbm_to_vmem [thread:$0]  %s1325_s1, 1024, %s24_s25, [#allocation6], %s984_s11, %s984_s11, %s985_s12  }
  0x13   :  { %977 = dma.done.wait [#allocation6], 1024  }
  0x14   :  { %978 = vsyncadd [#allocation6], 4294966272  ;;  %v986_v0 = vmov 0   ;;  %v873_v1 = vld [vmem:[#allocation5 + $0x4] ss:$16 sps:$4 sm:$0xff]   ;;  %vm162_vm0 = vcmask 261120   ;;  %v82_v13 = vlaneseq }
  0x15   :  { %207 = vmatprep.mubr.bf16.mxu0 %v986_v0  ;;  %280 = vmatprep.mubr.bf16.mxu1 %v986_v0  ;;  %v875_v2 = vld [vmem:[#allocation5 + $0xc] ss:$16 sps:$4 sm:$0xff]   ;;  %v877_v3 = vld [vmem:[#allocation5] ss:$16 sps:$4 sm:$0xff]   ;;  %v878_v4 = vld [vmem:[#allocation5 + $0x8] ss:$16 sps:$4 sm:$0xff]  }
  0x16   :  { %175 = vmatprep.subr.bf16.mxu0 %v873_v1  ;;  %248 = vmatprep.subr.bf16.mxu1 %v875_v2  ;;  %v879_v5 = vld [vmem:[#allocation5 + $0x24] ss:$16 sps:$4 sm:$0xff]   ;;  %v881_v6 = vld [vmem:[#allocation5 + $0x2c] ss:$16 sps:$4 sm:$0xff]   ;;  %v883_v7 = vld [vmem:[#allocation5 + $0x20] ss:$16 sps:$4 sm:$0xff]  }
  0x17   :  { %176 = vmatpush1.bf16.msra.mxu0 %v877_v3  ;;  %249 = vmatpush1.bf16.msra.mxu1 %v878_v4  ;;  %v884_v8 = vld [vmem:[#allocation5 + $0x28] ss:$16 sps:$4 sm:$0xff]   ;;  %v885_v9 = vld [vmem:[%s1324_s0] sm:$0xff]   ;;  %v887_v11 = vld [vmem:[%s1324_s0 + $0x10] sm:$0xff]   ;;  %v83_v14 = vshrl.u32 %v82_v13, 7  ;;  %s989_s24 = smov [#allocation9]  }
  0x18   :  { %177 = vmatprep.subr.bf16.mxu0 %v879_v5  ;;  %250 = vmatprep.subr.bf16.mxu1 %v881_v6  ;;  %v886_v10 = vld [vmem:[%s1324_s0 + $0x8] sm:$0xff]   ;;  %v888_v12 = vld [vmem:[%s1324_s0 + $0x18] sm:$0xff]   ;;  %v80_v17 = vld [vmem:[%s1326_s2] sm:$0xf]  ;;  %s785_s25 = sshll.u32 %s989_s24, 4  ;;  %s990_s26 = smov [#allocation11]   ;;  %s786_s25 = int_to_ptr.vmem [resolvable:$true] %s785_s25 }
  0x19   :  { %v84_v15 = vsub.s32 0, %v83_v14  ;;  %v92_v16 = vsub.s32 2, %v83_v14  ;;  %v88_v18 = vsub.s32 1, %v83_v14  ;;  %v96_v19 = vsub.s32 3, %v83_v14  ;;  %v841_v20 = vld [vmem:[%s1326_s2 + $0x4] sm:$0xf] }
  0x1a   :  { %v44_v21 = vld [vmem:[%s1328_s4] sm:$0xff]  ;;  %v817_v25 = vld [vmem:[%s1328_s4 + $0x10] sm:$0xff]  ;;  %v816_v27 = vld [vmem:[%s1328_s4 + $0x8] sm:$0xff]  ;;  %s797_s0 = sshll.u32 %s990_s26, 4  ;;  %s1290_s0 = int_to_ptr.vmem [resolvable:$true] %s797_s0 }
  0x1b   :  { %178 = vmatpush1.bf16.msra.mxu0 %v883_v7  ;;  %251 = vmatpush1.bf16.msra.mxu1 %v884_v8  ;;  %v1076_v22 = vrot.slane %v80_v17, %v84_v15  ;;  %v1081_v23 = vld [vmem:[%s1327_s3] ss:$0 sm:$0xff]  ;;  %v1083_v24 = vrot.slane %v80_v17, %v92_v16  ;;  %v1091_v26 = vld [vmem:[%s1327_s3 + $0x2] ss:$0 sm:$0xff]  ;;  %v1096_v28 = vrot.slane %v80_v17, %v88_v18  ;;  %v1107_v32 = vld [vmem:[%s1327_s3 + $0x1] ss:$0 sm:$0xff] }
  0x1c   :  { %v1098_v29 = vrot.slane %v80_v17, %v96_v19  ;;  %v1100_v30 = vrot.slane %v841_v20, %v84_v15  ;;  %v1102_v31 = vrot.slane %v841_v20, %v92_v16  ;;  %v818_v33 = vld [vmem:[%s1328_s4 + $0x18] sm:$0xff]  ;;  %v1115_v34 = vld [vmem:[%s1327_s3 + $0x3] ss:$0 sm:$0xff]  ;;  %v1117_v37 = vrot.slane %v841_v20, %v88_v18  ;;  %v1137_v54 = vld [vmem:[%s1327_s3 + $0x4] ss:$0 sm:$0xff] }
  0x1d   :  { %v1119_v38 = vrot.slane %v841_v20, %v96_v19  ;;  %v426_v40 = vmul.f32 %v1081_v23, %v44_v21  ;;  %v451_v42 = vmul.f32 %v1091_v26, %v817_v25  ;;  %v438_v46 = vmul.f32 %v1107_v32, %v816_v27  ;;  %v819_v53 = vld [vmem:[%s1328_s4 + $0x20] sm:$0xff] }
  0x1e   :  { %833 = vmatmul.mubr.msk.bf16.vlgmr.msra.gmra.mrb[0].mxu0 %vm162_vm0, %v885_v9  ;;  %837 = vmatmul.mubr.msk.bf16.vlgmr.msra.gmra.mrb[0].mxu1 %vm162_vm0, %v885_v9  ;;  %v464_v48 = vmul.f32 %v1115_v34, %v818_v33  ;;  %v476_v4 = vmul.f32 %v1137_v54, %v819_v53 }
  0x1f   :  { %217 = vmatprep.mubr.bf16.mxu0 %v986_v0  ;;  %290 = vmatprep.mubr.bf16.mxu1 %v986_v0 }
  0x26   :  { %834 = vmatmul.mubr.msk.bf16.gmra.mrb[4].mxu0 %vm162_vm0, %v886_v10  ;;  %838 = vmatmul.mubr.msk.bf16.gmra.mrb[4].mxu1 %vm162_vm0, %v886_v10 }
  0x27   :  { %227 = vmatprep.mubr.bf16.mxu0 %v986_v0  ;;  %300 = vmatprep.mubr.bf16.mxu1 %v986_v0 }
  0x2e   :  { %835 = vmatmul.mubr.msk.bf16.gmra.mrb[8].mxu0 %vm162_vm0, %v887_v11  ;;  %839 = vmatmul.mubr.msk.bf16.gmra.mrb[8].mxu1 %vm162_vm0, %v887_v11 }
  0x2f   :  { %237 = vmatprep.mubr.bf16.mxu0 %v986_v0  ;;  %310 = vmatprep.mubr.bf16.mxu1 %v986_v0 }
  0x36   :  { %836 = vmatmul.mubr.msk.bf16.gmra.mrb[12].mxu0 %vm162_vm0, %v888_v12  ;;  %840 = vmatmul.mubr.msk.bf16.gmra.mrb[12].mxu1 %vm162_vm0, %v888_v12 }
  0xf1   :  { %v209_v35 = vpop.f32.mrb[0].mxu0  ;;  %v282_v36 = vpop.f32.mrb[0].mxu1 }
  0xf2   :  { %v210_v39 = vadd.f32 %v209_v35, %v1076_v22  ;;  %v283_v41 = vadd.f32 %v282_v36, %v1083_v24  ;;  %v211_v43 = vpop.f32.mrb[1].mxu0  ;;  %v284_v44 = vpop.f32.mrb[1].mxu1 }
  0xf3   :  { %v212_v45 = vadd.f32 %v211_v43, %v1096_v28  ;;  %v285_v47 = vadd.f32 %v284_v44, %v1098_v29  ;;  %v213_v49 = vpop.f32.mrb[2].mxu0  ;;  %v286_v50 = vpop.f32.mrb[2].mxu1 }
  0xf4   :  { %v344_v51 = vmul.f32 %v1100_v30, %v210_v39  ;;  %v346_v52 = vmul.f32 %v1102_v31, %v283_v41  ;;  %v214_v55 = vadd.f32 %v213_v49, %v1076_v22  ;;  %v287_v56 = vadd.f32 %v286_v50, %v1083_v24  ;;  %v215_v57 = vpop.f32.mrb[3].mxu0  ;;  %v288_v58 = vpop.f32.mrb[3].mxu1  ;;  %v1160_v39 = vld [vmem:[%s1327_s3 + $0x5] ss:$0 sm:$0xff] }
  0xf5   :  { %v345_v59 = vmul.f32 %v1117_v37, %v212_v45  ;;  %v347_v60 = vmul.f32 %v1119_v38, %v285_v47  ;;  %v216_v61 = vadd.f32 %v215_v57, %v1096_v28  ;;  %v289_v62 = vadd.f32 %v288_v58, %v1098_v29 }
  0xf6   :  { %v428_v63 = vadd.f32 %v426_v40, %v344_v51  ;;  %v453_v0 = vadd.f32 %v451_v42, %v346_v52  ;;  %v350_v1 = vmul.f32 %v1102_v31, %v287_v56  ;;  %v348_v5 = vmul.f32 %v1100_v30, %v214_v55 }
  0xf7   :  { %v440_v2 = vadd.f32 %v438_v46, %v345_v59  ;;  %v466_v3 = vadd.f32 %v464_v48, %v347_v60  ;;  %v349_v8 = vmul.f32 %v1117_v37, %v216_v61  ;;  %v351_v11 = vmul.f32 %v1119_v38, %v289_v62  ;;  %v820_v59 = vld [vmem:[%s1328_s4 + $0x28] sm:$0xff]  ;;  %s988_s4 = smov [#allocation8]  }
  0xf8   :  { %v496_v6 = vmul.f32 %v1081_v23, %v428_v63  ;;  %v507_v7 = vmul.f32 %v1091_v26, %v453_v0  ;;  %s773_s23 = sshll.u32 %s988_s4, 4  ;;  %s774_s23 = int_to_ptr.vmem [resolvable:$true] %s773_s23 }
  0xf9   :  { %v442_v9 = vadd.f32 %v440_v2, %v428_v63  ;;  %v501_v10 = vmul.f32 %v1107_v32, %v440_v2  ;;  %v513_v12 = vmul.f32 %v1115_v34, %v466_v3  ;;  %v219_v13 = vpop.f32.mrb[4].mxu0  ;;  %v292_v14 = vpop.f32.mrb[4].mxu1  ;;  %s911_s27 = scalar_lea.vmem %s774_s23, 1024  ;;  %p916_p9 = scmp.lt.s32.totalorder %s774_s23, %s774_s23 }
  0xfa   :  { %v498_v15 = vadd.f32 %v496_v6, %v348_v5  ;;  %v509_v16 = vadd.f32 %v507_v7, %v350_v1  ;;  %v220_v17 = vadd.f32 %v219_v13, %v1076_v22  ;;  %v221_v18 = vpop.f32.mrb[5].mxu0  ;;  %v293_v19 = vadd.f32 %v292_v14, %v1083_v24  ;;  %v294_v20 = vpop.f32.mrb[5].mxu1  ;;  %p912_p8 = scmp.ne.s32.totalorder %s774_s23, %s911_s27  ;;  %p917_p10 = scmp.lt.s32.totalorder %s911_s27, %s911_s27 }
  0xfb   :  { %v455_v21 = vadd.f32 %v453_v0, %v442_v9  ;;  %v503_v25 = vadd.f32 %v501_v10, %v349_v8  ;;  %v515_v27 = vadd.f32 %v513_v12, %v351_v11  ;;  %v222_v33 = vadd.f32 %v221_v18, %v1096_v28  ;;  %v223_v35 = vpop.f32.mrb[6].mxu0  ;;  %v296_v36 = vpop.f32.mrb[6].mxu1 }
  0xfc   :  { %v352_v40 = vmul.f32 %v1100_v30, %v220_v17  ;;  %v535_v41 = vmul.f32 %v1081_v23, %v498_v15  ;;  %v224_v42 = vadd.f32 %v223_v35, %v1076_v22  ;;  %v225_v43 = vpop.f32.mrb[7].mxu0  ;;  %v354_v44 = vmul.f32 %v1102_v31, %v293_v19  ;;  %v298_v45 = vpop.f32.mrb[7].mxu1  ;;  %p918_p11 = por %p917_p10, %p916_p9 }
  0xfd   :  { %v468_v46 = vadd.f32 %v466_v3, %v455_v21  ;;  %v505_v47 = vadd.f32 %v503_v25, %v498_v15  ;;  %v353_v48 = vmul.f32 %v1117_v37, %v222_v33  ;;  %v540_v49 = vmul.f32 %v1107_v32, %v503_v25 }
  0xfe   :  { %v537_v50 = vadd.f32 %v535_v41, %v352_v40  ;;  %v356_v51 = vmul.f32 %v1100_v30, %v224_v42  ;;  %v226_v52 = vadd.f32 %v225_v43, %v1096_v28  ;;  %v546_v53 = vmul.f32 %v1091_v26, %v509_v16  ;;  %p919_p12 = pnand %p918_p11, %p912_p8 }
  0xff   :  { %v483_v55 = vmul.f32 %v1160_v39, %v468_v46  ;;  %v511_v56 = vadd.f32 %v509_v16, %v505_v47  ;;  %v542_v57 = vadd.f32 %v540_v49, %v353_v48  ;;  %v295_v58 = vadd.f32 %v294_v20, %v1098_v29 }
 0x100   :  { %v574_v60 = vmul.f32 %v1081_v23, %v537_v50  ;;  %v357_v61 = vmul.f32 %v1117_v37, %v226_v52  ;;  %v548_v62 = vadd.f32 %v546_v53, %v354_v44  ;;  %v552_v63 = vmul.f32 %v1115_v34, %v515_v27 }
 0x101   :  { %v484_v0 = vadd.f32 %v483_v55, %v476_v4  ;;  %v517_v1 = vadd.f32 %v515_v27, %v511_v56  ;;  %v544_v2 = vadd.f32 %v542_v57, %v537_v50  ;;  %v579_v3 = vmul.f32 %v1107_v32, %v542_v57  ;;  %v229_v5 = vpop.f32.mrb[8].mxu0  ;;  %v302_v6 = vpop.f32.mrb[8].mxu1 }
 0x102   :  { %v576_v7 = vadd.f32 %v574_v60, %v356_v51  ;;  %v355_v8 = vmul.f32 %v1119_v38, %v295_v58  ;;  %v297_v9 = vadd.f32 %v296_v36, %v1083_v24  ;;  %v585_v10 = vmul.f32 %v1091_v26, %v548_v62  ;;  %v231_v11 = vpop.f32.mrb[9].mxu0  ;;  %v1183_v12 = vpop.f32.mrb[9].mxu1 }
 0x103   :  { %v486_v13 = vsub.f32 %v484_v0, %v820_v59  ;;  %v520_v14 = vmul.f32 %v1160_v39, %v517_v1  ;;  %v581_v4 = vadd.f32 %v579_v3, %v357_v61  ;;  %v550_v15 = vadd.f32 %v548_v62, %v544_v2  ;;  %v233_v16 = vpop.f32.mrb[10].mxu0  ;;  %v1186_v17 = vpop.f32.mrb[10].mxu1 }
 0x104   :  { %v554_v18 = vadd.f32 %v552_v63, %v355_v8  ;;  %v358_v19 = vmul.f32 %v1102_v31, %v297_v9  ;;  %v299_v20 = vadd.f32 %v298_v45, %v1098_v29  ;;  %v230_v21 = vadd.f32 %v229_v5, %v1076_v22  ;;  %v235_v25 = vpop.f32.mrb[11].mxu0  ;;  %v308_v27 = vpop.f32.mrb[11].mxu1 }
 0x105   :  { %492 = vst [vmem:[#allocation8] sm:$0xff] %v486_v13  ;;  %vm487_vm1 = vcmp.gt.f32.partialorder %v486_v13, 1.0  ;;  %v519_v33 = vmul.f32 %v1137_v54, %v486_v13  ;;  %v583_v35 = vadd.f32 %v581_v4, %v576_v7  ;;  %v613_v36 = vmul.f32 %v1081_v23, %v576_v7 }
 0x106   :  { %v987_v40 = vmov 0.0   ;;  %v556_v42 = vadd.f32 %v554_v18, %v550_v15  ;;  %v587_v43 = vadd.f32 %v585_v10, %v358_v19  ;;  %v359_v44 = vmul.f32 %v1119_v38, %v299_v20 }
 0x107   :  { %v853_v41 = vsel %vm487_vm1, 1.0, %v987_v40  ;;  %v521_v45 = vadd.f32 %v520_v14, %v519_v33  ;;  %v591_v47 = vmul.f32 %v1115_v34, %v554_v18  ;;  %v360_v48 = vmul.f32 %v1100_v30, %v230_v21 }
 0x108   :  { %v493_v46 = vpack.c.bf16 %v853_v41, %v853_v41  ;;  %v559_v49 = vmul.f32 %v1160_v39, %v556_v42  ;;  %v589_v50 = vadd.f32 %v587_v43, %v583_v35  ;;  %v232_v51 = vadd.f32 %v231_v11, %v1096_v28 }
 0x109   :  { %v618_v52 = vmul.f32 %v1107_v32, %v581_v4  ;;  %v523_v53 = vsub.f32 %v521_v45, %v853_v41  ;;  %v593_v55 = vadd.f32 %v591_v47, %v359_v44  ;;  %v615_v56 = vadd.f32 %v613_v36, %v360_v48  ;;  %v239_v58 = vpop.f32.mrb[12].mxu0  ;;  %v1201_v59 = vpop.f32.mrb[12].mxu1 }
 0x10a   :  { %494 = vst [vmem:[#allocation9] sm:$0xf] %v493_v46  ;;  %v234_v57 = vadd.f32 %v233_v16, %v1076_v22  ;;  %v361_v60 = vmul.f32 %v1117_v37, %v232_v51  ;;  %v236_v61 = vadd.f32 %v235_v25, %v1096_v28  ;;  %v303_v62 = vadd.f32 %v302_v6, %v1083_v24  ;;  %v241_v0 = vpop.f32.mrb[13].mxu0  ;;  %v1207_v1 = vpop.f32.mrb[13].mxu1 }
 0x10b   :  { %v624_v63 = vmul.f32 %v1091_v26, %v587_v43  ;;  %530 = vst [vmem:[#allocation8 + $0x8] sm:$0xff] %v523_v53  ;;  %vm524_vm2 = vcmp.gt.f32.partialorder %v523_v53, 1.0  ;;  %v558_v2 = vmul.f32 %v1137_v54, %v523_v53  ;;  %v595_v3 = vadd.f32 %v593_v55, %v589_v50  ;;  %v243_v7 = vpop.f32.mrb[14].mxu0  ;;  %v1211_v8 = vpop.f32.mrb[14].mxu1 }
 0x10c   :  { %v364_v5 = vmul.f32 %v1100_v30, %v234_v57  ;;  %v854_v9 = vsel %vm524_vm2, 1.0, %v987_v40  ;;  %v620_v10 = vadd.f32 %v618_v52, %v361_v60  ;;  %v652_v6 = vmul.f32 %v1081_v23, %v615_v56  ;;  %v245_v13 = vpop.f32.mrb[15].mxu0  ;;  %v1216_v14 = vpop.f32.mrb[15].mxu1 }
 0x10d   :  { %v365_v11 = vmul.f32 %v1117_v37, %v236_v61  ;;  %v531_v4 = vpack.c.bf16 %v854_v9, %v854_v9  ;;  %v560_v15 = vadd.f32 %v559_v49, %v558_v2  ;;  %v598_v16 = vmul.f32 %v1160_v39, %v595_v3 }
 0x10e   :  { %v362_v18 = vmul.f32 %v1102_v31, %v303_v62  ;;  %v622_v19 = vadd.f32 %v620_v10, %v615_v56  ;;  %v654_v20 = vadd.f32 %v652_v6, %v364_v5  ;;  %v657_v21 = vmul.f32 %v1107_v32, %v620_v10 }
 0x10f   :  { %v305_v25 = vadd.f32 %v1183_v12, %v1098_v29  ;;  %533 = vst [vmem:[#allocation9 + $0x4] sm:$0xf] %v531_v4  ;;  %v562_v33 = vsub.f32 %v560_v15, %v854_v9  ;;  %v630_v36 = vmul.f32 %v1115_v34, %v593_v55  ;;  %v307_v41 = vadd.f32 %v1186_v17, %v1083_v24 }
 0x110   :  { %v626_v35 = vadd.f32 %v624_v63, %v362_v18  ;;  %v659_v42 = vadd.f32 %v657_v21, %v365_v11  ;;  %v309_v44 = vadd.f32 %v308_v27, %v1098_v29  ;;  %v240_v46 = vadd.f32 %v239_v58, %v1076_v22 }
 0x111   :  { %v363_v43 = vmul.f32 %v1119_v38, %v305_v25  ;;  %569 = vst [vmem:[#allocation8 + $0x10] sm:$0xff] %v562_v33  ;;  %vm563_vm3 = vcmp.gt.f32.partialorder %v562_v33, 1.0  ;;  %v597_v45 = vmul.f32 %v1137_v54, %v562_v33  ;;  %v366_v47 = vmul.f32 %v1102_v31, %v307_v41 }
 0x112   :  { %v628_v12 = vadd.f32 %v626_v35, %v622_v19  ;;  %v855_v48 = vsel %vm563_vm3, 1.0, %v987_v40  ;;  %v661_v49 = vadd.f32 %v659_v42, %v654_v20  ;;  %v663_v17 = vmul.f32 %v1091_v26, %v626_v35 }
 0x113   :  { %v632_v50 = vadd.f32 %v630_v36, %v363_v43  ;;  %v570_v51 = vpack.c.bf16 %v855_v48, %v855_v48  ;;  %v599_v52 = vadd.f32 %v598_v16, %v597_v45  ;;  %v367_v53 = vmul.f32 %v1119_v38, %v309_v44 }
 0x114   :  { %v368_v27 = vmul.f32 %v1100_v30, %v240_v46  ;;  %v665_v56 = vadd.f32 %v663_v17, %v366_v47  ;;  %v691_v58 = vmul.f32 %v1081_v23, %v654_v20  ;;  %v242_v61 = vadd.f32 %v241_v0, %v1096_v28 }
 0x115   :  { %v634_v55 = vadd.f32 %v632_v50, %v628_v12  ;;  %v669_v57 = vmul.f32 %v1115_v34, %v632_v50  ;;  %572 = vst [vmem:[#allocation9 + $0x8] sm:$0xf] %v570_v51  ;;  %v601_v60 = vsub.f32 %v599_v52, %v855_v48  ;;  %v696_v62 = vmul.f32 %v1107_v32, %v659_v42 }
 0x116   :  { %v244_v63 = vadd.f32 %v243_v7, %v1076_v22  ;;  %v667_v3 = vadd.f32 %v665_v56, %v661_v49  ;;  %v693_v9 = vadd.f32 %v691_v58, %v368_v27  ;;  %v369_v6 = vmul.f32 %v1117_v37, %v242_v61 }
 0x117   :  { %v637_v2 = vmul.f32 %v1160_v39, %v634_v55  ;;  %v671_v5 = vadd.f32 %v669_v57, %v367_v53  ;;  %608 = vst [vmem:[#allocation8 + $0x18] sm:$0xff] %v601_v60  ;;  %vm602_vm4 = vcmp.gt.f32.partialorder %v601_v60, 1.0  ;;  %v636_v10 = vmul.f32 %v1137_v54, %v601_v60 }
 0x118   :  { %v372_v11 = vmul.f32 %v1100_v30, %v244_v63  ;;  %v856_v4 = vsel %vm602_vm4, 1.0, %v987_v40  ;;  %v730_v15 = vmul.f32 %v1081_v23, %v693_v9  ;;  %v246_v22 = vadd.f32 %v245_v13, %v1096_v28 }
 0x119   :  { %v673_v0 = vadd.f32 %v671_v5, %v667_v3  ;;  %v609_v7 = vpack.c.bf16 %v856_v4, %v856_v4  ;;  %v638_v16 = vadd.f32 %v637_v2, %v636_v10  ;;  %v698_v18 = vadd.f32 %v696_v62, %v369_v6 }
 0x11a   :  { %v313_v19 = vadd.f32 %v1201_v59, %v1083_v24  ;;  %v732_v21 = vadd.f32 %v730_v15, %v372_v11  ;;  %v373_v25 = vmul.f32 %v1117_v37, %v246_v22  ;;  %v702_v30 = vmul.f32 %v1091_v26, %v665_v56 }
 0x11b   :  { %v676_v20 = vmul.f32 %v1160_v39, %v673_v0  ;;  %611 = vst [vmem:[#allocation9 + $0xc] sm:$0xf] %v609_v7  ;;  %v640_v33 = vsub.f32 %v638_v16, %v856_v4  ;;  %v700_v35 = vadd.f32 %v698_v18, %v693_v9  ;;  %v735_v23 = vmul.f32 %v1107_v32, %v698_v18 }
 0x11c   :  { %v370_v28 = vmul.f32 %v1102_v31, %v313_v19  ;;  %733 = vst [vmem:[#allocation11] sm:$0xff] %v732_v21  ;;  %v315_v13 = vadd.f32 %v1207_v1, %v1098_v29  ;;  %v708_v59 = vmul.f32 %v1115_v34, %v671_v5  ;;  %v317_v36 = vadd.f32 %v1211_v8, %v1083_v24 }
 0x11d   :  { %v319_v37 = vadd.f32 %v1216_v14, %v1098_v29  ;;  %647 = vst [vmem:[#allocation8 + $0x20] sm:$0xff] %v640_v33  ;;  %vm641_vm5 = vcmp.gt.f32.partialorder %v640_v33, 1.0  ;;  %v675_v41 = vmul.f32 %v1137_v54, %v640_v33  ;;  %v737_v42 = vadd.f32 %v735_v23, %v373_v25 }
 0x11e   :  { %v704_v32 = vadd.f32 %v702_v30, %v370_v28  ;;  %v857_v43 = vsel %vm641_vm5, 1.0, %v987_v40  ;;  %v371_v44 = vmul.f32 %v1119_v38, %v315_v13  ;;  %v374_v1 = vmul.f32 %v1102_v31, %v317_v36 }
 0x11f   :  { %v648_v46 = vpack.c.bf16 %v857_v43, %v857_v43  ;;  %v677_v45 = vadd.f32 %v676_v20, %v675_v41  ;;  %738 = vst [vmem:[#allocation11 + $0x8] sm:$0xff] %v737_v42  ;;  %v739_v12 = vadd.f32 %v737_v42, %v732_v21  ;;  %v375_v14 = vmul.f32 %v1119_v38, %v319_v37 }
 0x120   :  { %v706_v24 = vadd.f32 %v704_v32, %v700_v35  ;;  %v710_v8 = vadd.f32 %v708_v59, %v371_v44  ;;  %v741_v29 = vmul.f32 %v1091_v26, %v704_v32 }
 0x121   :  { %650 = vst [vmem:[#allocation9 + $0x10] sm:$0xf] %v648_v46  ;;  %v679_v47 = vsub.f32 %v677_v45, %v857_v43 }
 0x122   :  { %v712_v48 = vadd.f32 %v710_v8, %v706_v24  ;;  %v743_v49 = vadd.f32 %v741_v29, %v374_v1  ;;  %v747_v50 = vmul.f32 %v1115_v34, %v710_v8 }
 0x123   :  { %686 = vst [vmem:[#allocation8 + $0x28] sm:$0xff] %v679_v47  ;;  %vm680_vm6 = vcmp.gt.f32.partialorder %v679_v47, 1.0  ;;  %v714_v31 = vmul.f32 %v1137_v54, %v679_v47 }
 0x124   :  { %v858_v17 = vsel %vm680_vm6, 1.0, %v987_v40  ;;  %v715_v51 = vmul.f32 %v1160_v39, %v712_v48  ;;  %744 = vst [vmem:[#allocation11 + $0x10] sm:$0xff] %v743_v49  ;;  %v745_v52 = vadd.f32 %v743_v49, %v739_v12  ;;  %v749_v53 = vadd.f32 %v747_v50, %v375_v14 }
 0x125   :  { %v687_v26 = vpack.c.bf16 %v858_v17, %v858_v17 }
 0x126   :  { %v716_v27 = vadd.f32 %v715_v51, %v714_v31  ;;  %750 = vst [vmem:[#allocation11 + $0x18] sm:$0xff] %v749_v53  ;;  %v751_v38 = vadd.f32 %v749_v53, %v745_v52 }
 0x127   :  { %689 = vst [vmem:[#allocation9 + $0x14] sm:$0xf] %v687_v26 }
 0x128   :  { %v718_v55 = vsub.f32 %v716_v27, %v858_v17  ;;  %v754_v56 = vmul.f32 %v1160_v39, %v751_v38 }
 0x12a   :  { %725 = vst [vmem:[#allocation8 + $0x30] sm:$0xff] %v718_v55  ;;  %vm719_vm7 = vcmp.gt.f32.partialorder %v718_v55, 1.0  ;;  %v753_v34 = vmul.f32 %v1137_v54, %v718_v55 }
 0x12b   :  { %v859_v57 = vsel %vm719_vm7, 1.0, %v987_v40 }
 0x12c   :  { %v726_v58 = vpack.c.bf16 %v859_v57, %v859_v57  ;;  %v755_v60 = vadd.f32 %v754_v56, %v753_v34 }
 0x12e   :  { %728 = vst [vmem:[#allocation9 + $0x18] sm:$0xf] %v726_v58  ;;  %v757_v61 = vsub.f32 %v755_v60, %v859_v57 }
 0x130   :  { %vm758_vm8 = vcmp.gt.f32.partialorder %v757_v61, 1.0  ;;  %764 = vst [vmem:[#allocation8 + $0x38] sm:$0xff] %v757_v61 }
 0x131   :  { %v860_v62 = vsel %vm758_vm8, 1.0, %v987_v40 }
 0x132   :  { %922 = shalt.err (!%p919_p12)
}
 0x133   :  { %s923_s30 = scalar_lea.hbm %s1329_s5, 1024 }
 0x134   :  { %p924_p13 = scmp.ne.s32.totalorder %s1329_s5, %s923_s30  ;;  %p927_p0 = scmp.lt.u32.totalorder %s923_s30, %s1329_s5 }
 0x136   :  { %p929_p1 = pnand %p927_p0, %p924_p13 }
 0x138   :  { %932 = shalt.err (!%p929_p1)
}
 0x139   :  { %s991_s11 = smov 128   ;;  %s992_s12 = smov 8   ;;  %v765_v54 = vpack.c.bf16 %v860_v62, %v860_v62 }
 0x13a   :  { %779 = dma.vmem_to_hbm [thread:$0]  %s774_s23, 1024, %s1329_s5, [#allocation7], %s991_s11, %s991_s11, %s992_s12  }
 0x13b   :  { %767 = vst [vmem:[#allocation9 + $0x1c] sm:$0xf] %v765_v54  ;;  %s933_s1 = scalar_lea.vmem %s786_s25, 512  ;;  %p938_p3 = scmp.lt.s32.totalorder %s786_s25, %s786_s25 }
 0x13c   :  { %p934_p2 = scmp.ne.s32.totalorder %s786_s25, %s933_s1  ;;  %p939_p4 = scmp.lt.s32.totalorder %s933_s1, %s933_s1 }
 0x13e   :  { %p940_p5 = por %p939_p4, %p938_p3 }
 0x140   :  { %p941_p6 = pnand %p940_p5, %p934_p2 }
 0x142   :  { %944 = shalt.err (!%p941_p6)
}
 0x143   :  { %s945_s17 = scalar_lea.hbm %s1330_s6, 512 }
 0x144   :  { %p946_p7 = scmp.ne.s32.totalorder %s1330_s6, %s945_s17  ;;  %p949_p8 = scmp.lt.u32.totalorder %s945_s17, %s1330_s6 }
 0x146   :  { %p951_p9 = pnand %p949_p8, %p946_p7 }
 0x148   :  { %954 = shalt.err (!%p951_p9)
}
 0x149   :  { %s993_s21 = smov 64   ;;  %s994_s3 = smov 4  }
 0x14a   :  { %791 = dma.vmem_to_hbm [thread:$0]  %s786_s25, 512, %s1330_s6, [#allocation10], %s993_s21, %s993_s21, %s994_s3  }
 0x14b   :  { %s955_s23 = scalar_lea.vmem %s1290_s0, 512  ;;  %p960_p11 = scmp.lt.s32.totalorder %s1290_s0, %s1290_s0 }
 0x14c   :  { %p956_p10 = scmp.ne.s32.totalorder %s1290_s0, %s955_s23  ;;  %p961_p12 = scmp.lt.s32.totalorder %s955_s23, %s955_s23 }
 0x14e   :  { %p962_p13 = por %p961_p12, %p960_p11 }
 0x150   :  { %p963_p0 = pnand %p962_p13, %p956_p10 }
 0x152   :  { %966 = shalt.err (!%p963_p0)
}
 0x153   :  { %s967_s27 = scalar_lea.hbm %s1331_s7, 512 }
 0x154   :  { %p968_p1 = scmp.ne.s32.totalorder %s1331_s7, %s967_s27  ;;  %p971_p2 = scmp.lt.u32.totalorder %s967_s27, %s1331_s7 }
 0x156   :  { %p973_p3 = pnand %p971_p2, %p968_p1 }
 0x158   :  { %976 = shalt.err (!%p973_p3)
}
 0x159   :  { %803 = dma.vmem_to_hbm [thread:$0]  %s1290_s0, 512, %s1331_s7, [#allocation10], %s991_s11, %s991_s11, %s992_s12  }
 0x15a   :  { %979 = dma.done.wait [#allocation7], 1024  }
 0x15b   :  { %980 = vsyncadd [#allocation7], 4294966272 }
 0x15c   :  { %981 = dma.done.wait [#allocation10], 1024  }
 0x15d   :  { %982 = vsyncadd [#allocation10], 4294966272 }
 0x15e   :  { %813 = vsyncpa [#allocation6], 1 }
 0x15f   :  { %814 = vsyncpa [#allocation7], 1 }
 0x160   :  { %815 = vsyncpa [#allocation10], 1 }

</bundles_post_ra>
